<compile_context>
chip_gen: v6e
topology: v6e:2x2x1
jax: 0.10.0
libtpu: 0.0.40
codegen_flags: <defaults>
</compile_context>

<pallas_src>
import functools
import math

import jax
import jax.numpy as jnp
from jax.experimental import pallas as pl
from jax.experimental.pallas import tpu as pltpu

HIDDEN = 32
NUM_CLASSES = 8
OUT_LANES = 128  # lane-dense row holding the three scalar losses


# ----------------------------------------------------------------------------
# Fused kernel: backbone (flatten->fc->relu->fc) + full AdaMatch loss math
# ----------------------------------------------------------------------------
def _adamatch_fused_kernel(n_src, n_trg, n_ul,
                           scalars_ref,                # SMEM (2,): [tau, mu]
                           lbl_src_ref, lbl_trg_ref,   # SMEM int32 labels
                           xsrc_ref, xtrg_ref,         # weak labeled groups (bf16)
                           xbsrc_ref, xbtrg_ref,       # strong labeled groups
                           xul_ref, xbul_ref,          # weak / strong unlabeled
                           wfe_ref, bfe_ref, wcls_ref, bcls_ref,
                           out_ref):                   # (1, 128) f32
    tau = scalars_ref[0]
    mu = scalars_ref[1]
    n_labeled = n_src + n_trg
    k = wcls_ref.shape[1]

    wfe = wfe_ref[...]          # (D, H) bf16
    bfe = bfe_ref[...]          # (1, H) f32
    wcls = wcls_ref[...]        # (H, K) f32
    bcls = bcls_ref[...]        # (1, K) f32

    # backbone_fe (flatten -> fc -> relu) + classifier, per input group.
    # bf16 MXU operands, f32 accumulation; loss math stays f32 (v5e-safe).
    def logits_of(x_ref):
        h = jnp.dot(x_ref[...], wfe, preferred_element_type=jnp.float32) + bfe
        h = jnp.maximum(h, 0.0)
        return jnp.dot(h, wcls, preferred_element_type=jnp.float32) + bcls

    # TODO(synk): the second ("pp") forward pass under disabled BatchNorm
    # tracking and the random lamb blend are identities for this BN/dropout
    # free synthetic backbone (logits_pp == logits_p, lamb*p+(1-lamb)*p == p),
    # so both are elided; not equivalent once the backbone gains BN/dropout.
    lg_src_w = logits_of(xsrc_ref)    # (n_src, K) source-domain weak
    lg_trg_w = logits_of(xtrg_ref)    # (n_trg, K) target-domain weak (labeled)
    lg_src_s = logits_of(xbsrc_ref)   # strong-augmented counterparts
    lg_trg_s = logits_of(xbtrg_ref)
    lg_ul_w = logits_of(xul_ref)      # (n_ul, K) unlabeled weak
    lg_ul_s = logits_of(xbul_ref)     # (n_ul, K) unlabeled strong

    def onehot_of(lbl_ref, rows):
        # dense one-hot built in-kernel from SMEM scalars
        row_iota = jax.lax.broadcasted_iota(jnp.int32, (rows, 1), 0)
        lbl_col = jnp.zeros((rows, 1), jnp.int32)
        for j in range(rows):                       # static, tiny unroll
            lbl_col = jnp.where(row_iota == j, lbl_ref[j], lbl_col)
        cls_iota = jax.lax.broadcasted_iota(jnp.int32, (rows, k), 1)
        return (cls_iota == lbl_col).astype(jnp.float32)

    onehot_src = onehot_of(lbl_src_ref, n_src)
    onehot_trg = onehot_of(lbl_trg_ref, n_trg)

    def weak_stats(logits, onehot):
        # One max/exp/sum pass reused for softmax AND logsumexp AND CE.
        m = jnp.max(logits, axis=1, keepdims=True)
        e = jnp.exp(logits - m)
        s = jnp.sum(e, axis=1, keepdims=True)
        probs = e / s                                               # exact divide
        lse = m + jnp.log(s)
        ce = lse - jnp.sum(onehot * logits, axis=1, keepdims=True)
        return (jnp.sum(probs, axis=0, keepdims=True),              # (1, K)
                jnp.sum(jnp.max(probs, axis=1, keepdims=True),
                        axis=0, keepdims=True),                     # (1, 1)
                jnp.sum(ce, axis=0, keepdims=True))                 # (1, 1)

    def ce_sum(logits, onehot):
        m = jnp.max(logits, axis=1, keepdims=True)
        lse = m + jnp.log(jnp.sum(jnp.exp(logits - m), axis=1, keepdims=True))
        ce = lse - jnp.sum(onehot * logits, axis=1, keepdims=True)
        return jnp.sum(ce, axis=0, keepdims=True)

    # --- labeled ("source") branch: reductions decomposed over src / trg so
    # the image tensors never need concatenating (in HBM or in VMEM). ---
    colsum_s, rmax_s, cew_s = weak_stats(lg_src_w, onehot_src)
    colsum_t, rmax_t, cew_t = weak_stats(lg_trg_w, onehot_trg)
    ps_source_colsum = colsum_s + colsum_t                   # (1, K)
    rowmax_sum = rmax_s + rmax_t                             # (1, 1)
    ce_weak_sum = cew_s + cew_t                              # (1, 1)
    ce_strong_sum = ce_sum(lg_src_s, onehot_src) + ce_sum(lg_trg_s, onehot_trg)
    # CrossEntropyLoss(mean) on weak + strong, halved
    source_loss = (ce_weak_sum + ce_strong_sum) / (2.0 * n_labeled)

    # --- unlabeled ("target") branch ---
    m_u = jnp.max(lg_ul_w, axis=1, keepdims=True)
    e_u = jnp.exp(lg_ul_w - m_u)
    pseudolabels_target = e_u / jnp.sum(e_u, axis=1, keepdims=True)   # (n_ul,K)

    # distribution alignment (epsilon placement matches the PyTorch reference)
    expectation_ratio = ((1e-6 + ps_source_colsum / n_labeled)
                         / (1e-6 + jnp.sum(pseudolabels_target, axis=0,
                                           keepdims=True) / n_ul))    # (1, K)
    scaled = pseudolabels_target * expectation_ratio
    l1 = jnp.sum(jnp.abs(scaled), axis=1, keepdims=True)
    final_pseudolabels = scaled / jnp.maximum(l1, 1e-12)     # F.normalize(p=1)

    c_tau = tau * (rowmax_sum / n_labeled)                   # (1, 1)

    max_values = jnp.max(final_pseudolabels, axis=1, keepdims=True)   # (n_ul,1)
    col_iota = jax.lax.broadcasted_iota(jnp.int32, (n_ul, k), 1)
    is_max = final_pseudolabels >= max_values
    pls_cls = jnp.min(jnp.where(is_max, col_iota, k), axis=1, keepdims=True)
    mask = (max_values >= c_tau).astype(jnp.float32)

    tgt_onehot = (col_iota == pls_cls).astype(jnp.float32)
    m_ts = jnp.max(lg_ul_s, axis=1, keepdims=True)
    lse_ts = m_ts + jnp.log(jnp.sum(jnp.exp(lg_ul_s - m_ts),
                                    axis=1, keepdims=True))
    ce_ts = lse_ts - jnp.sum(tgt_onehot * lg_ul_s, axis=1, keepdims=True)
    # reference is (loss * mask).mean() -> divide by n_ul, NOT mask.sum()
    target_loss = jnp.sum(ce_ts * mask, axis=0, keepdims=True) / n_ul

    loss = source_loss + mu * target_loss                    # (1, 1)

    # ---- lane-dense scalar output: one (1, 128) row, unmasked store ----
    lane = jax.lax.broadcasted_iota(jnp.int32, (1, OUT_LANES), 1)
    row = jnp.where(lane == 0, loss, jnp.zeros((1, OUT_LANES), jnp.float32))
    row = jnp.where(lane == 1, source_loss, row)
    row = jnp.where(lane == 2, target_loss, row)
    out_ref[...] = row


# ----------------------------------------------------------------------------
# Full AdaMatch forward (mirrors AdaMatch_loss.get_losses), thin XLA wrapper
# ----------------------------------------------------------------------------
def adamatch_forward(hparams, params,
                     im_data_src, im_data_bar_src,
                     im_data_trg, im_data_bar_trg,
                     im_data_trg_ul, im_data_bar_trg_ul,
                     gt_labels_src, gt_labels_trg,
                     step, warm_steps):
    w_fe, b_fe, w_cls, b_cls = params
    d, hid = w_fe.shape
    k = w_cls.shape[1]

    # flatten is a free reshape; bf16 cast halves the MXU-operand HBM traffic
    def flat(x):
        return x.reshape(x.shape[0], -1).astype(jnp.bfloat16)

    x_src, x_trg = flat(im_data_src), flat(im_data_trg)
    x_bsrc, x_btrg = flat(im_data_bar_src), flat(im_data_bar_trg)
    x_ul, x_bul = flat(im_data_trg_ul), flat(im_data_bar_trg_ul)

    n_src, n_trg, n_ul = x_src.shape[0], x_trg.shape[0], x_ul.shape[0]

    pi = jnp.float32(math.pi)
    step_f = jnp.float32(step)
    mu = 0.5 - jnp.cos(jnp.minimum(pi, pi * step_f / (warm_steps + 1e-5))) / 2.0
    scalars = jnp.stack([jnp.float32(hparams["tau"]), mu.astype(jnp.float32)])

    w_fe_bf = w_fe.astype(jnp.bfloat16)

    def vspec(shape):
        return pl.BlockSpec(shape, lambda i: (0,) * len(shape))

    smem = pl.BlockSpec(memory_space=pltpu.MemorySpace.SMEM)

    kern = functools.partial(_adamatch_fused_kernel, n_src, n_trg, n_ul)
    out = pl.pallas_call(
        kern,
        out_shape=jax.ShapeDtypeStruct((1, OUT_LANES), jnp.float32),
        grid=(1,),
        in_specs=[
            smem,                                     # [tau, mu]
            smem,                                     # gt_labels_src
            smem,                                     # gt_labels_trg
            vspec((n_src, d)), vspec((n_trg, d)),     # weak labeled groups
            vspec((n_src, d)), vspec((n_trg, d)),     # strong labeled groups
            vspec((n_ul, d)), vspec((n_ul, d)),       # unlabeled weak/strong
            vspec((d, hid)), vspec((1, hid)),         # w_fe, b_fe
            vspec((hid, k)), vspec((1, k)),           # w_cls, b_cls
        ],
        out_specs=vspec((1, OUT_LANES)),
        compiler_params=pltpu.CompilerParams(
            dimension_semantics=("arbitrary",)),
        # NOTE: grid=(1,) has nothing to pipeline and total VMEM use is <1 MiB,
        # so vmem_limit_bytes / pl.Buffered(1) are left at defaults; row tiling
        # with partial-sum scratch is the scaling path for larger batch/D.
    )(scalars,
      gt_labels_src.astype(jnp.int32), gt_labels_trg.astype(jnp.int32),
      x_src, x_trg, x_bsrc, x_btrg, x_ul, x_bul,
      w_fe_bf, b_fe, w_cls, b_cls)

    return out[0, 0], out[0, 1], out[0, 2]


if __name__ == "__main__":
    key = jax.random.PRNGKey(0)
    ks = jax.random.split(key, 12)

    B_s, B_t, B_u = 4, 4, 8          # labeled src / labeled trg / unlabeled trg
    C, H, W = 4, 16, 16
    D = C * H * W

    im_data_src = jax.random.normal(ks[0], (B_s, C, H, W), jnp.float32)
    im_data_bar_src = jax.random.normal(ks[1], (B_s, C, H, W), jnp.float32)
    im_data_trg = jax.random.normal(ks[2], (B_t, C, H, W), jnp.float32)
    im_data_bar_trg = jax.random.normal(ks[3], (B_t, C, H, W), jnp.float32)
    im_data_trg_ul = jax.random.normal(ks[4], (B_u, C, H, W), jnp.float32)
    im_data_bar_trg_ul = jax.random.normal(ks[5], (B_u, C, H, W), jnp.float32)
    gt_labels_src = jax.random.randint(ks[6], (B_s,), 0, NUM_CLASSES, jnp.int32)
    gt_labels_trg = jax.random.randint(ks[7], (B_t,), 0, NUM_CLASSES, jnp.int32)

    # deterministic synthetic backbone / classifier parameters
    w_fe = 0.05 * jax.random.normal(ks[8], (D, HIDDEN), jnp.float32)
    b_fe = 0.01 * jax.random.normal(ks[9], (1, HIDDEN), jnp.float32)
    w_cls = 0.1 * jax.random.normal(ks[10], (HIDDEN, NUM_CLASSES), jnp.float32)
    b_cls = 0.01 * jax.random.normal(ks[11], (1, NUM_CLASSES), jnp.float32)
    params = (w_fe, b_fe, w_cls, b_cls)

    hparams = {"tau": 0.9}
    step, warm_steps = 10, 100

    loss, source_loss, target_loss = adamatch_forward(
        hparams, params,
        im_data_src, im_data_bar_src,
        im_data_trg, im_data_bar_trg,
        im_data_trg_ul, im_data_bar_trg_ul,
        gt_labels_src, gt_labels_trg,
        step, warm_steps)

    jax.block_until_ready((loss, source_loss, target_loss))
    print("KERNEL_OK")
</pallas_src>

<mosaic_0001>
module attributes {stable_mosaic.version = 11 : i64} {
  func.func @_adamatch_fused_kernel(%arg0: i32, %arg1: memref<2xf32, #tpu.memory_space<smem>>, %arg2: memref<4xi32, #tpu.memory_space<smem>>, %arg3: memref<4xi32, #tpu.memory_space<smem>>, %arg4: memref<4x1024xbf16, #tpu.memory_space<vmem>>, %arg5: memref<4x1024xbf16, #tpu.memory_space<vmem>>, %arg6: memref<4x1024xbf16, #tpu.memory_space<vmem>>, %arg7: memref<4x1024xbf16, #tpu.memory_space<vmem>>, %arg8: memref<8x1024xbf16, #tpu.memory_space<vmem>>, %arg9: memref<8x1024xbf16, #tpu.memory_space<vmem>>, %arg10: memref<1024x32xbf16, #tpu.memory_space<vmem>>, %arg11: memref<1x32xf32, #tpu.memory_space<vmem>>, %arg12: memref<32x8xf32, #tpu.memory_space<vmem>>, %arg13: memref<1x8xf32, #tpu.memory_space<vmem>>, %arg14: memref<1x128xf32, #tpu.memory_space<vmem>>) attributes {dimension_semantics = [#tpu.dimension_semantics<arbitrary>], iteration_bounds = array<i64: 1>, scalar_prefetch = 0 : i64, scratch_operands = 0 : i64, tpu.core_type = #tpu.core_type<tc>, window_params = [{transform_indices = @transform_0, window_bounds = array<i64: 2>}, {transform_indices = @transform_1, window_bounds = array<i64: 4>}, {transform_indices = @transform_2, window_bounds = array<i64: 4>}, {pipeline_mode = #tpu.pipeline_mode<synchronous>, transform_indices = @transform_3, window_bounds = array<i64: 4, 1024>}, {pipeline_mode = #tpu.pipeline_mode<synchronous>, transform_indices = @transform_4, window_bounds = array<i64: 4, 1024>}, {pipeline_mode = #tpu.pipeline_mode<synchronous>, transform_indices = @transform_5, window_bounds = array<i64: 4, 1024>}, {pipeline_mode = #tpu.pipeline_mode<synchronous>, transform_indices = @transform_6, window_bounds = array<i64: 4, 1024>}, {pipeline_mode = #tpu.pipeline_mode<synchronous>, transform_indices = @transform_7, window_bounds = array<i64: 8, 1024>}, {pipeline_mode = #tpu.pipeline_mode<synchronous>, transform_indices = @transform_8, window_bounds = array<i64: 8, 1024>}, {pipeline_mode = #tpu.pipeline_mode<synchronous>, transform_indices = @transform_9, window_bounds = array<i64: 1024, 32>}, {pipeline_mode = #tpu.pipeline_mode<synchronous>, transform_indices = @transform_10, window_bounds = array<i64: 1, 32>}, {pipeline_mode = #tpu.pipeline_mode<synchronous>, transform_indices = @transform_11, window_bounds = array<i64: 32, 8>}, {pipeline_mode = #tpu.pipeline_mode<synchronous>, transform_indices = @transform_12, window_bounds = array<i64: 1, 8>}, {pipeline_mode = #tpu.pipeline_mode<synchronous>, transform_indices = @transform_13, window_bounds = array<i64: 1, 128>}]} {
    %c0 = arith.constant 0 : index
    %0 = memref.load %arg1[%c0] : memref<2xf32, #tpu.memory_space<smem>>
    %c1 = arith.constant 1 : index
    %1 = memref.load %arg1[%c1] : memref<2xf32, #tpu.memory_space<smem>>
    %c0_0 = arith.constant 0 : index
    %c0_1 = arith.constant 0 : index
    %2 = vector.load %arg10[%c0_0, %c0_1] : memref<1024x32xbf16, #tpu.memory_space<vmem>>, vector<1024x32xbf16>
    %c0_2 = arith.constant 0 : index
    %c0_3 = arith.constant 0 : index
    %3 = vector.load %arg11[%c0_2, %c0_3] : memref<1x32xf32, #tpu.memory_space<vmem>>, vector<1x32xf32>
    %c0_4 = arith.constant 0 : index
    %c0_5 = arith.constant 0 : index
    %4 = vector.load %arg12[%c0_4, %c0_5] : memref<32x8xf32, #tpu.memory_space<vmem>>, vector<32x8xf32>
    %c0_6 = arith.constant 0 : index
    %c0_7 = arith.constant 0 : index
    %5 = vector.load %arg13[%c0_6, %c0_7] : memref<1x8xf32, #tpu.memory_space<vmem>>, vector<1x8xf32>
    %c0_8 = arith.constant 0 : index
    %c0_9 = arith.constant 0 : index
    %6 = vector.load %arg4[%c0_8, %c0_9] : memref<4x1024xbf16, #tpu.memory_space<vmem>>, vector<4x1024xbf16>
    %cst = arith.constant dense<0.000000e+00> : vector<4x32xf32>
    %7 = tpu.matmul %6, %2, %cst {dimension_numbers = #tpu.dot_dimension_numbers<[1], [0], [0], [1], [0, 0, 1, 1], [], []>} : vector<4x1024xbf16>, vector<1024x32xbf16>, vector<4x32xf32> -> vector<4x32xf32>
    %8 = vector.broadcast %3 : vector<1x32xf32> to vector<4x32xf32>
    %9 = arith.addf %7, %8 : vector<4x32xf32>
    %cst_10 = arith.constant 0.000000e+00 : f32
    %10 = vector.broadcast %cst_10 : f32 to vector<4x32xf32>
    %11 = arith.maximumf %9, %10 : vector<4x32xf32>
    %cst_11 = arith.constant dense<0.000000e+00> : vector<4x8xf32>
    %12 = tpu.matmul %11, %4, %cst_11 {dimension_numbers = #tpu.dot_dimension_numbers<[1], [0], [0], [1], [0, 0, 1, 1], [], []>} : vector<4x32xf32>, vector<32x8xf32>, vector<4x8xf32> -> vector<4x8xf32>
    %13 = vector.broadcast %5 : vector<1x8xf32> to vector<4x8xf32>
    %14 = arith.addf %12, %13 : vector<4x8xf32>
    %c0_12 = arith.constant 0 : index
    %c0_13 = arith.constant 0 : index
    %15 = vector.load %arg5[%c0_12, %c0_13] : memref<4x1024xbf16, #tpu.memory_space<vmem>>, vector<4x1024xbf16>
    %cst_14 = arith.constant dense<0.000000e+00> : vector<4x32xf32>
    %16 = tpu.matmul %15, %2, %cst_14 {dimension_numbers = #tpu.dot_dimension_numbers<[1], [0], [0], [1], [0, 0, 1, 1], [], []>} : vector<4x1024xbf16>, vector<1024x32xbf16>, vector<4x32xf32> -> vector<4x32xf32>
    %17 = vector.broadcast %3 : vector<1x32xf32> to vector<4x32xf32>
    %18 = arith.addf %16, %17 : vector<4x32xf32>
    %cst_15 = arith.constant 0.000000e+00 : f32
    %19 = vector.broadcast %cst_15 : f32 to vector<4x32xf32>
    %20 = arith.maximumf %18, %19 : vector<4x32xf32>
    %cst_16 = arith.constant dense<0.000000e+00> : vector<4x8xf32>
    %21 = tpu.matmul %20, %4, %cst_16 {dimension_numbers = #tpu.dot_dimension_numbers<[1], [0], [0], [1], [0, 0, 1, 1], [], []>} : vector<4x32xf32>, vector<32x8xf32>, vector<4x8xf32> -> vector<4x8xf32>
    %22 = vector.broadcast %5 : vector<1x8xf32> to vector<4x8xf32>
    %23 = arith.addf %21, %22 : vector<4x8xf32>
    %c0_17 = arith.constant 0 : index
    %c0_18 = arith.constant 0 : index
    %24 = vector.load %arg6[%c0_17, %c0_18] : memref<4x1024xbf16, #tpu.memory_space<vmem>>, vector<4x1024xbf16>
    %cst_19 = arith.constant dense<0.000000e+00> : vector<4x32xf32>
    %25 = tpu.matmul %24, %2, %cst_19 {dimension_numbers = #tpu.dot_dimension_numbers<[1], [0], [0], [1], [0, 0, 1, 1], [], []>} : vector<4x1024xbf16>, vector<1024x32xbf16>, vector<4x32xf32> -> vector<4x32xf32>
    %26 = vector.broadcast %3 : vector<1x32xf32> to vector<4x32xf32>
    %27 = arith.addf %25, %26 : vector<4x32xf32>
    %cst_20 = arith.constant 0.000000e+00 : f32
    %28 = vector.broadcast %cst_20 : f32 to vector<4x32xf32>
    %29 = arith.maximumf %27, %28 : vector<4x32xf32>
    %cst_21 = arith.constant dense<0.000000e+00> : vector<4x8xf32>
    %30 = tpu.matmul %29, %4, %cst_21 {dimension_numbers = #tpu.dot_dimension_numbers<[1], [0], [0], [1], [0, 0, 1, 1], [], []>} : vector<4x32xf32>, vector<32x8xf32>, vector<4x8xf32> -> vector<4x8xf32>
    %31 = vector.broadcast %5 : vector<1x8xf32> to vector<4x8xf32>
    %32 = arith.addf %30, %31 : vector<4x8xf32>
    %c0_22 = arith.constant 0 : index
    %c0_23 = arith.constant 0 : index
    %33 = vector.load %arg7[%c0_22, %c0_23] : memref<4x1024xbf16, #tpu.memory_space<vmem>>, vector<4x1024xbf16>
    %cst_24 = arith.constant dense<0.000000e+00> : vector<4x32xf32>
    %34 = tpu.matmul %33, %2, %cst_24 {dimension_numbers = #tpu.dot_dimension_numbers<[1], [0], [0], [1], [0, 0, 1, 1], [], []>} : vector<4x1024xbf16>, vector<1024x32xbf16>, vector<4x32xf32> -> vector<4x32xf32>
    %35 = vector.broadcast %3 : vector<1x32xf32> to vector<4x32xf32>
    %36 = arith.addf %34, %35 : vector<4x32xf32>
    %cst_25 = arith.constant 0.000000e+00 : f32
    %37 = vector.broadcast %cst_25 : f32 to vector<4x32xf32>
    %38 = arith.maximumf %36, %37 : vector<4x32xf32>
    %cst_26 = arith.constant dense<0.000000e+00> : vector<4x8xf32>
    %39 = tpu.matmul %38, %4, %cst_26 {dimension_numbers = #tpu.dot_dimension_numbers<[1], [0], [0], [1], [0, 0, 1, 1], [], []>} : vector<4x32xf32>, vector<32x8xf32>, vector<4x8xf32> -> vector<4x8xf32>
    %40 = vector.broadcast %5 : vector<1x8xf32> to vector<4x8xf32>
    %41 = arith.addf %39, %40 : vector<4x8xf32>
    %c0_27 = arith.constant 0 : index
    %c0_28 = arith.constant 0 : index
    %42 = vector.load %arg8[%c0_27, %c0_28] : memref<8x1024xbf16, #tpu.memory_space<vmem>>, vector<8x1024xbf16>
    %cst_29 = arith.constant dense<0.000000e+00> : vector<8x32xf32>
    %43 = tpu.matmul %42, %2, %cst_29 {dimension_numbers = #tpu.dot_dimension_numbers<[1], [0], [0], [1], [0, 0, 1, 1], [], []>} : vector<8x1024xbf16>, vector<1024x32xbf16>, vector<8x32xf32> -> vector<8x32xf32>
    %44 = vector.broadcast %3 : vector<1x32xf32> to vector<8x32xf32>
    %45 = arith.addf %43, %44 : vector<8x32xf32>
    %cst_30 = arith.constant 0.000000e+00 : f32
    %46 = vector.broadcast %cst_30 : f32 to vector<8x32xf32>
    %47 = arith.maximumf %45, %46 : vector<8x32xf32>
    %cst_31 = arith.constant dense<0.000000e+00> : vector<8x8xf32>
    %48 = tpu.matmul %47, %4, %cst_31 {dimension_numbers = #tpu.dot_dimension_numbers<[1], [0], [0], [1], [0, 0, 1, 1], [], []>} : vector<8x32xf32>, vector<32x8xf32>, vector<8x8xf32> -> vector<8x8xf32>
    %49 = vector.broadcast %5 : vector<1x8xf32> to vector<8x8xf32>
    %50 = arith.addf %48, %49 : vector<8x8xf32>
    %c0_32 = arith.constant 0 : index
    %c0_33 = arith.constant 0 : index
    %51 = vector.load %arg9[%c0_32, %c0_33] : memref<8x1024xbf16, #tpu.memory_space<vmem>>, vector<8x1024xbf16>
    %cst_34 = arith.constant dense<0.000000e+00> : vector<8x32xf32>
    %52 = tpu.matmul %51, %2, %cst_34 {dimension_numbers = #tpu.dot_dimension_numbers<[1], [0], [0], [1], [0, 0, 1, 1], [], []>} : vector<8x1024xbf16>, vector<1024x32xbf16>, vector<8x32xf32> -> vector<8x32xf32>
    %53 = vector.broadcast %3 : vector<1x32xf32> to vector<8x32xf32>
    %54 = arith.addf %52, %53 : vector<8x32xf32>
    %cst_35 = arith.constant 0.000000e+00 : f32
    %55 = vector.broadcast %cst_35 : f32 to vector<8x32xf32>
    %56 = arith.maximumf %54, %55 : vector<8x32xf32>
    %cst_36 = arith.constant dense<0.000000e+00> : vector<8x8xf32>
    %57 = tpu.matmul %56, %4, %cst_36 {dimension_numbers = #tpu.dot_dimension_numbers<[1], [0], [0], [1], [0, 0, 1, 1], [], []>} : vector<8x32xf32>, vector<32x8xf32>, vector<8x8xf32> -> vector<8x8xf32>
    %58 = vector.broadcast %5 : vector<1x8xf32> to vector<8x8xf32>
    %59 = arith.addf %57, %58 : vector<8x8xf32>
    %60 = tpu.iota {dimensions = array<i32: 0>} : vector<4x1xi32>
    %c0_i32 = arith.constant 0 : i32
    %61 = vector.broadcast %c0_i32 : i32 to vector<4x1xi32>
    %c0_i32_37 = arith.constant 0 : i32
    %62 = vector.broadcast %c0_i32_37 : i32 to vector<4x1xi32>
    %63 = arith.cmpi eq, %60, %62 : vector<4x1xi32>
    %c0_38 = arith.constant 0 : index
    %64 = memref.load %arg2[%c0_38] : memref<4xi32, #tpu.memory_space<smem>>
    %65 = vector.broadcast %64 : i32 to vector<4x1xi32>
    %66 = arith.select %63, %65, %61 : vector<4x1xi1>, vector<4x1xi32>
    %c1_i32 = arith.constant 1 : i32
    %67 = vector.broadcast %c1_i32 : i32 to vector<4x1xi32>
    %68 = arith.cmpi eq, %60, %67 : vector<4x1xi32>
    %c1_39 = arith.constant 1 : index
    %69 = memref.load %arg2[%c1_39] : memref<4xi32, #tpu.memory_space<smem>>
    %70 = vector.broadcast %69 : i32 to vector<4x1xi32>
    %71 = arith.select %68, %70, %66 : vector<4x1xi1>, vector<4x1xi32>
    %c2_i32 = arith.constant 2 : i32
    %72 = vector.broadcast %c2_i32 : i32 to vector<4x1xi32>
    %73 = arith.cmpi eq, %60, %72 : vector<4x1xi32>
    %c2 = arith.constant 2 : index
    %74 = memref.load %arg2[%c2] : memref<4xi32, #tpu.memory_space<smem>>
    %75 = vector.broadcast %74 : i32 to vector<4x1xi32>
    %76 = arith.select %73, %75, %71 : vector<4x1xi1>, vector<4x1xi32>
    %c3_i32 = arith.constant 3 : i32
    %77 = vector.broadcast %c3_i32 : i32 to vector<4x1xi32>
    %78 = arith.cmpi eq, %60, %77 : vector<4x1xi32>
    %c3 = arith.constant 3 : index
    %79 = memref.load %arg2[%c3] : memref<4xi32, #tpu.memory_space<smem>>
    %80 = vector.broadcast %79 : i32 to vector<4x1xi32>
    %81 = arith.select %78, %80, %76 : vector<4x1xi1>, vector<4x1xi32>
    %82 = tpu.iota {dimensions = array<i32: 1>} : vector<4x8xi32>
    %83 = vector.broadcast %81 : vector<4x1xi32> to vector<4x8xi32>
    %84 = arith.cmpi eq, %82, %83 : vector<4x8xi32>
    %85 = arith.extui %84 : vector<4x8xi1> to vector<4x8xi32>
    %86 = arith.sitofp %85 : vector<4x8xi32> to vector<4x8xf32>
    %87 = tpu.iota {dimensions = array<i32: 0>} : vector<4x1xi32>
    %c0_i32_40 = arith.constant 0 : i32
    %88 = vector.broadcast %c0_i32_40 : i32 to vector<4x1xi32>
    %c0_i32_41 = arith.constant 0 : i32
    %89 = vector.broadcast %c0_i32_41 : i32 to vector<4x1xi32>
    %90 = arith.cmpi eq, %87, %89 : vector<4x1xi32>
    %c0_42 = arith.constant 0 : index
    %91 = memref.load %arg3[%c0_42] : memref<4xi32, #tpu.memory_space<smem>>
    %92 = vector.broadcast %91 : i32 to vector<4x1xi32>
    %93 = arith.select %90, %92, %88 : vector<4x1xi1>, vector<4x1xi32>
    %c1_i32_43 = arith.constant 1 : i32
    %94 = vector.broadcast %c1_i32_43 : i32 to vector<4x1xi32>
    %95 = arith.cmpi eq, %87, %94 : vector<4x1xi32>
    %c1_44 = arith.constant 1 : index
    %96 = memref.load %arg3[%c1_44] : memref<4xi32, #tpu.memory_space<smem>>
    %97 = vector.broadcast %96 : i32 to vector<4x1xi32>
    %98 = arith.select %95, %97, %93 : vector<4x1xi1>, vector<4x1xi32>
    %c2_i32_45 = arith.constant 2 : i32
    %99 = vector.broadcast %c2_i32_45 : i32 to vector<4x1xi32>
    %100 = arith.cmpi eq, %87, %99 : vector<4x1xi32>
    %c2_46 = arith.constant 2 : index
    %101 = memref.load %arg3[%c2_46] : memref<4xi32, #tpu.memory_space<smem>>
    %102 = vector.broadcast %101 : i32 to vector<4x1xi32>
    %103 = arith.select %100, %102, %98 : vector<4x1xi1>, vector<4x1xi32>
    %c3_i32_47 = arith.constant 3 : i32
    %104 = vector.broadcast %c3_i32_47 : i32 to vector<4x1xi32>
    %105 = arith.cmpi eq, %87, %104 : vector<4x1xi32>
    %c3_48 = arith.constant 3 : index
    %106 = memref.load %arg3[%c3_48] : memref<4xi32, #tpu.memory_space<smem>>
    %107 = vector.broadcast %106 : i32 to vector<4x1xi32>
    %108 = arith.select %105, %107, %103 : vector<4x1xi1>, vector<4x1xi32>
    %109 = tpu.iota {dimensions = array<i32: 1>} : vector<4x8xi32>
    %110 = vector.broadcast %108 : vector<4x1xi32> to vector<4x8xi32>
    %111 = arith.cmpi eq, %109, %110 : vector<4x8xi32>
    %112 = arith.extui %111 : vector<4x8xi1> to vector<4x8xi32>
    %113 = arith.sitofp %112 : vector<4x8xi32> to vector<4x8xf32>
    %cst_49 = arith.constant dense<0xFF800000> : vector<4xf32>
    %114 = vector.multi_reduction <maximumf>, %14, %cst_49 [1] : vector<4x8xf32> to vector<4xf32>
    %115 = vector.shape_cast %114 : vector<4xf32> to vector<4x1xf32>
    %116 = vector.broadcast %115 : vector<4x1xf32> to vector<4x8xf32>
    %117 = arith.subf %14, %116 : vector<4x8xf32>
    %118 = math.exp %117 : vector<4x8xf32>
    %cst_50 = arith.constant dense<0.000000e+00> : vector<4xf32>
    %119 = vector.multi_reduction <add>, %118, %cst_50 [1] : vector<4x8xf32> to vector<4xf32>
    %120 = vector.shape_cast %119 : vector<4xf32> to vector<4x1xf32>
    %121 = vector.broadcast %120 : vector<4x1xf32> to vector<4x8xf32>
    %122 = arith.divf %118, %121 : vector<4x8xf32>
    %123 = math.log %120 : vector<4x1xf32>
    %124 = arith.addf %115, %123 : vector<4x1xf32>
    %125 = arith.mulf %86, %14 : vector<4x8xf32>
    %cst_51 = arith.constant dense<0.000000e+00> : vector<4xf32>
    %126 = vector.multi_reduction <add>, %125, %cst_51 [1] : vector<4x8xf32> to vector<4xf32>
    %127 = vector.shape_cast %126 : vector<4xf32> to vector<4x1xf32>
    %128 = arith.subf %124, %127 : vector<4x1xf32>
    %cst_52 = arith.constant dense<0.000000e+00> : vector<8xf32>
    %129 = vector.multi_reduction <add>, %122, %cst_52 [0] : vector<4x8xf32> to vector<8xf32>
    %130 = vector.shape_cast %129 : vector<8xf32> to vector<1x8xf32>
    %cst_53 = arith.constant dense<0xFF800000> : vector<4xf32>
    %131 = vector.multi_reduction <maximumf>, %122, %cst_53 [1] : vector<4x8xf32> to vector<4xf32>
    %132 = vector.shape_cast %131 : vector<4xf32> to vector<4x1xf32>
    %cst_54 = arith.constant dense<0.000000e+00> : vector<1xf32>
    %133 = vector.multi_reduction <add>, %132, %cst_54 [0] : vector<4x1xf32> to vector<1xf32>
    %134 = vector.shape_cast %133 : vector<1xf32> to vector<1x1xf32>
    %cst_55 = arith.constant dense<0.000000e+00> : vector<1xf32>
    %135 = vector.multi_reduction <add>, %128, %cst_55 [0] : vector<4x1xf32> to vector<1xf32>
    %136 = vector.shape_cast %135 : vector<1xf32> to vector<1x1xf32>
    %cst_56 = arith.constant dense<0xFF800000> : vector<4xf32>
    %137 = vector.multi_reduction <maximumf>, %23, %cst_56 [1] : vector<4x8xf32> to vector<4xf32>
    %138 = vector.shape_cast %137 : vector<4xf32> to vector<4x1xf32>
    %139 = vector.broadcast %138 : vector<4x1xf32> to vector<4x8xf32>
    %140 = arith.subf %23, %139 : vector<4x8xf32>
    %141 = math.exp %140 : vector<4x8xf32>
    %cst_57 = arith.constant dense<0.000000e+00> : vector<4xf32>
    %142 = vector.multi_reduction <add>, %141, %cst_57 [1] : vector<4x8xf32> to vector<4xf32>
    %143 = vector.shape_cast %142 : vector<4xf32> to vector<4x1xf32>
    %144 = vector.broadcast %143 : vector<4x1xf32> to vector<4x8xf32>
    %145 = arith.divf %141, %144 : vector<4x8xf32>
    %146 = math.log %143 : vector<4x1xf32>
    %147 = arith.addf %138, %146 : vector<4x1xf32>
    %148 = arith.mulf %113, %23 : vector<4x8xf32>
    %cst_58 = arith.constant dense<0.000000e+00> : vector<4xf32>
    %149 = vector.multi_reduction <add>, %148, %cst_58 [1] : vector<4x8xf32> to vector<4xf32>
    %150 = vector.shape_cast %149 : vector<4xf32> to vector<4x1xf32>
    %151 = arith.subf %147, %150 : vector<4x1xf32>
    %cst_59 = arith.constant dense<0.000000e+00> : vector<8xf32>
    %152 = vector.multi_reduction <add>, %145, %cst_59 [0] : vector<4x8xf32> to vector<8xf32>
    %153 = vector.shape_cast %152 : vector<8xf32> to vector<1x8xf32>
    %cst_60 = arith.constant dense<0xFF800000> : vector<4xf32>
    %154 = vector.multi_reduction <maximumf>, %145, %cst_60 [1] : vector<4x8xf32> to vector<4xf32>
    %155 = vector.shape_cast %154 : vector<4xf32> to vector<4x1xf32>
    %cst_61 = arith.constant dense<0.000000e+00> : vector<1xf32>
    %156 = vector.multi_reduction <add>, %155, %cst_61 [0] : vector<4x1xf32> to vector<1xf32>
    %157 = vector.shape_cast %156 : vector<1xf32> to vector<1x1xf32>
    %cst_62 = arith.constant dense<0.000000e+00> : vector<1xf32>
    %158 = vector.multi_reduction <add>, %151, %cst_62 [0] : vector<4x1xf32> to vector<1xf32>
    %159 = vector.shape_cast %158 : vector<1xf32> to vector<1x1xf32>
    %160 = arith.addf %130, %153 : vector<1x8xf32>
    %161 = arith.addf %134, %157 : vector<1x1xf32>
    %162 = arith.addf %136, %159 : vector<1x1xf32>
    %cst_63 = arith.constant dense<0xFF800000> : vector<4xf32>
    %163 = vector.multi_reduction <maximumf>, %32, %cst_63 [1] : vector<4x8xf32> to vector<4xf32>
    %164 = vector.shape_cast %163 : vector<4xf32> to vector<4x1xf32>
    %165 = vector.broadcast %164 : vector<4x1xf32> to vector<4x8xf32>
    %166 = arith.subf %32, %165 : vector<4x8xf32>
    %167 = math.exp %166 : vector<4x8xf32>
    %cst_64 = arith.constant dense<0.000000e+00> : vector<4xf32>
    %168 = vector.multi_reduction <add>, %167, %cst_64 [1] : vector<4x8xf32> to vector<4xf32>
    %169 = vector.shape_cast %168 : vector<4xf32> to vector<4x1xf32>
    %170 = math.log %169 : vector<4x1xf32>
    %171 = arith.addf %164, %170 : vector<4x1xf32>
    %172 = arith.mulf %86, %32 : vector<4x8xf32>
    %cst_65 = arith.constant dense<0.000000e+00> : vector<4xf32>
    %173 = vector.multi_reduction <add>, %172, %cst_65 [1] : vector<4x8xf32> to vector<4xf32>
    %174 = vector.shape_cast %173 : vector<4xf32> to vector<4x1xf32>
    %175 = arith.subf %171, %174 : vector<4x1xf32>
    %cst_66 = arith.constant dense<0.000000e+00> : vector<1xf32>
    %176 = vector.multi_reduction <add>, %175, %cst_66 [0] : vector<4x1xf32> to vector<1xf32>
    %177 = vector.shape_cast %176 : vector<1xf32> to vector<1x1xf32>
    %cst_67 = arith.constant dense<0xFF800000> : vector<4xf32>
    %178 = vector.multi_reduction <maximumf>, %41, %cst_67 [1] : vector<4x8xf32> to vector<4xf32>
    %179 = vector.shape_cast %178 : vector<4xf32> to vector<4x1xf32>
    %180 = vector.broadcast %179 : vector<4x1xf32> to vector<4x8xf32>
    %181 = arith.subf %41, %180 : vector<4x8xf32>
    %182 = math.exp %181 : vector<4x8xf32>
    %cst_68 = arith.constant dense<0.000000e+00> : vector<4xf32>
    %183 = vector.multi_reduction <add>, %182, %cst_68 [1] : vector<4x8xf32> to vector<4xf32>
    %184 = vector.shape_cast %183 : vector<4xf32> to vector<4x1xf32>
    %185 = math.log %184 : vector<4x1xf32>
    %186 = arith.addf %179, %185 : vector<4x1xf32>
    %187 = arith.mulf %113, %41 : vector<4x8xf32>
    %cst_69 = arith.constant dense<0.000000e+00> : vector<4xf32>
    %188 = vector.multi_reduction <add>, %187, %cst_69 [1] : vector<4x8xf32> to vector<4xf32>
    %189 = vector.shape_cast %188 : vector<4xf32> to vector<4x1xf32>
    %190 = arith.subf %186, %189 : vector<4x1xf32>
    %cst_70 = arith.constant dense<0.000000e+00> : vector<1xf32>
    %191 = vector.multi_reduction <add>, %190, %cst_70 [0] : vector<4x1xf32> to vector<1xf32>
    %192 = vector.shape_cast %191 : vector<1xf32> to vector<1x1xf32>
    %193 = arith.addf %177, %192 : vector<1x1xf32>
    %194 = arith.addf %162, %193 : vector<1x1xf32>
    %cst_71 = arith.constant 1.600000e+01 : f32
    %195 = vector.broadcast %cst_71 : f32 to vector<1x1xf32>
    %196 = arith.divf %194, %195 : vector<1x1xf32>
    %cst_72 = arith.constant dense<0xFF800000> : vector<8xf32>
    %197 = vector.multi_reduction <maximumf>, %50, %cst_72 [1] : vector<8x8xf32> to vector<8xf32>
    %198 = vector.shape_cast %197 : vector<8xf32> to vector<8x1xf32>
    %199 = vector.broadcast %198 : vector<8x1xf32> to vector<8x8xf32>
    %200 = arith.subf %50, %199 : vector<8x8xf32>
    %201 = math.exp %200 : vector<8x8xf32>
    %cst_73 = arith.constant dense<0.000000e+00> : vector<8xf32>
    %202 = vector.multi_reduction <add>, %201, %cst_73 [1] : vector<8x8xf32> to vector<8xf32>
    %203 = vector.shape_cast %202 : vector<8xf32> to vector<8x1xf32>
    %204 = vector.broadcast %203 : vector<8x1xf32> to vector<8x8xf32>
    %205 = arith.divf %201, %204 : vector<8x8xf32>
    %cst_74 = arith.constant 8.000000e+00 : f32
    %206 = vector.broadcast %cst_74 : f32 to vector<1x8xf32>
    %207 = arith.divf %160, %206 : vector<1x8xf32>
    %cst_75 = arith.constant 9.99999997E-7 : f32
    %208 = vector.broadcast %cst_75 : f32 to vector<1x8xf32>
    %209 = arith.addf %208, %207 : vector<1x8xf32>
    %cst_76 = arith.constant dense<0.000000e+00> : vector<8xf32>
    %210 = vector.multi_reduction <add>, %205, %cst_76 [0] : vector<8x8xf32> to vector<8xf32>
    %211 = vector.shape_cast %210 : vector<8xf32> to vector<1x8xf32>
    %cst_77 = arith.constant 8.000000e+00 : f32
    %212 = vector.broadcast %cst_77 : f32 to vector<1x8xf32>
    %213 = arith.divf %211, %212 : vector<1x8xf32>
    %cst_78 = arith.constant 9.99999997E-7 : f32
    %214 = vector.broadcast %cst_78 : f32 to vector<1x8xf32>
    %215 = arith.addf %214, %213 : vector<1x8xf32>
    %216 = arith.divf %209, %215 : vector<1x8xf32>
    %217 = vector.broadcast %216 : vector<1x8xf32> to vector<8x8xf32>
    %218 = arith.mulf %205, %217 : vector<8x8xf32>
    %219 = math.absf %218 : vector<8x8xf32>
    %cst_79 = arith.constant dense<0.000000e+00> : vector<8xf32>
    %220 = vector.multi_reduction <add>, %219, %cst_79 [1] : vector<8x8xf32> to vector<8xf32>
    %221 = vector.shape_cast %220 : vector<8xf32> to vector<8x1xf32>
    %cst_80 = arith.constant 9.99999996E-13 : f32
    %222 = vector.broadcast %cst_80 : f32 to vector<8x1xf32>
    %223 = arith.maximumf %221, %222 : vector<8x1xf32>
    %224 = vector.broadcast %223 : vector<8x1xf32> to vector<8x8xf32>
    %225 = arith.divf %218, %224 : vector<8x8xf32>
    %cst_81 = arith.constant 8.000000e+00 : f32
    %226 = vector.broadcast %cst_81 : f32 to vector<1x1xf32>
    %227 = arith.divf %161, %226 : vector<1x1xf32>
    %228 = vector.broadcast %0 : f32 to vector<1x1xf32>
    %229 = arith.mulf %228, %227 : vector<1x1xf32>
    %cst_82 = arith.constant dense<0xFF800000> : vector<8xf32>
    %230 = vector.multi_reduction <maximumf>, %225, %cst_82 [1] : vector<8x8xf32> to vector<8xf32>
    %231 = vector.shape_cast %230 : vector<8xf32> to vector<8x1xf32>
    %232 = tpu.iota {dimensions = array<i32: 1>} : vector<8x8xi32>
    %233 = vector.broadcast %231 : vector<8x1xf32> to vector<8x8xf32>
    %234 = arith.cmpf oge, %225, %233 : vector<8x8xf32>
    %c8_i32 = arith.constant 8 : i32
    %235 = vector.broadcast %c8_i32 : i32 to vector<8x8xi32>
    %236 = arith.select %234, %232, %235 : vector<8x8xi1>, vector<8x8xi32>
    %cst_83 = arith.constant dense<2147483647> : vector<8xi32>
    %237 = vector.multi_reduction <minsi>, %236, %cst_83 [1] : vector<8x8xi32> to vector<8xi32>
    %238 = vector.shape_cast %237 : vector<8xi32> to vector<8x1xi32>
    %239 = vector.broadcast %229 : vector<1x1xf32> to vector<8x1xf32>
    %240 = arith.cmpf oge, %231, %239 : vector<8x1xf32>
    %241 = arith.extui %240 : vector<8x1xi1> to vector<8x1xi32>
    %242 = arith.sitofp %241 : vector<8x1xi32> to vector<8x1xf32>
    %243 = vector.broadcast %238 : vector<8x1xi32> to vector<8x8xi32>
    %244 = arith.cmpi eq, %232, %243 : vector<8x8xi32>
    %245 = arith.extui %244 : vector<8x8xi1> to vector<8x8xi32>
    %246 = arith.sitofp %245 : vector<8x8xi32> to vector<8x8xf32>
    %cst_84 = arith.constant dense<0xFF800000> : vector<8xf32>
    %247 = vector.multi_reduction <maximumf>, %59, %cst_84 [1] : vector<8x8xf32> to vector<8xf32>
    %248 = vector.shape_cast %247 : vector<8xf32> to vector<8x1xf32>
    %249 = vector.broadcast %248 : vector<8x1xf32> to vector<8x8xf32>
    %250 = arith.subf %59, %249 : vector<8x8xf32>
    %251 = math.exp %250 : vector<8x8xf32>
    %cst_85 = arith.constant dense<0.000000e+00> : vector<8xf32>
    %252 = vector.multi_reduction <add>, %251, %cst_85 [1] : vector<8x8xf32> to vector<8xf32>
    %253 = vector.shape_cast %252 : vector<8xf32> to vector<8x1xf32>
    %254 = math.log %253 : vector<8x1xf32>
    %255 = arith.addf %248, %254 : vector<8x1xf32>
    %256 = arith.mulf %246, %59 : vector<8x8xf32>
    %cst_86 = arith.constant dense<0.000000e+00> : vector<8xf32>
    %257 = vector.multi_reduction <add>, %256, %cst_86 [1] : vector<8x8xf32> to vector<8xf32>
    %258 = vector.shape_cast %257 : vector<8xf32> to vector<8x1xf32>
    %259 = arith.subf %255, %258 : vector<8x1xf32>
    %260 = arith.mulf %259, %242 : vector<8x1xf32>
    %cst_87 = arith.constant dense<0.000000e+00> : vector<1xf32>
    %261 = vector.multi_reduction <add>, %260, %cst_87 [0] : vector<8x1xf32> to vector<1xf32>
    %262 = vector.shape_cast %261 : vector<1xf32> to vector<1x1xf32>
    %cst_88 = arith.constant 8.000000e+00 : f32
    %263 = vector.broadcast %cst_88 : f32 to vector<1x1xf32>
    %264 = arith.divf %262, %263 : vector<1x1xf32>
    %265 = vector.broadcast %1 : f32 to vector<1x1xf32>
    %266 = arith.mulf %265, %264 : vector<1x1xf32>
    %267 = arith.addf %196, %266 : vector<1x1xf32>
    %268 = tpu.iota {dimensions = array<i32: 1>} : vector<1x128xi32>
    %c0_i32_89 = arith.constant 0 : i32
    %269 = vector.broadcast %c0_i32_89 : i32 to vector<1x128xi32>
    %270 = arith.cmpi eq, %268, %269 : vector<1x128xi32>
    %cst_90 = arith.constant 0.000000e+00 : f32
    %271 = vector.broadcast %cst_90 : f32 to vector<1x128xf32>
    %272 = vector.shape_cast %267 : vector<1x1xf32> to vector<1x1xf32>
    %273 = vector.broadcast %272 : vector<1x1xf32> to vector<1x128xf32>
    %274 = arith.select %270, %273, %271 : vector<1x128xi1>, vector<1x128xf32>
    %c1_i32_91 = arith.constant 1 : i32
    %275 = vector.broadcast %c1_i32_91 : i32 to vector<1x128xi32>
    %276 = arith.cmpi eq, %268, %275 : vector<1x128xi32>
    %277 = vector.shape_cast %196 : vector<1x1xf32> to vector<1x1xf32>
    %278 = vector.broadcast %277 : vector<1x1xf32> to vector<1x128xf32>
    %279 = arith.select %276, %278, %274 : vector<1x128xi1>, vector<1x128xf32>
    %c2_i32_92 = arith.constant 2 : i32
    %280 = vector.broadcast %c2_i32_92 : i32 to vector<1x128xi32>
    %281 = arith.cmpi eq, %268, %280 : vector<1x128xi32>
    %282 = vector.shape_cast %264 : vector<1x1xf32> to vector<1x1xf32>
    %283 = vector.broadcast %282 : vector<1x1xf32> to vector<1x128xf32>
    %284 = arith.select %281, %283, %279 : vector<1x128xi1>, vector<1x128xf32>
    %c0_93 = arith.constant 0 : index
    %c0_94 = arith.constant 0 : index
    %285 = vector.load %arg14[%c0_93, %c0_94] : memref<1x128xf32, #tpu.memory_space<vmem>>, vector<1x128xf32>
    tpu.vector_store %arg14[%c0_93, %c0_94], %284 {strides = array<i32>} : memref<1x128xf32, #tpu.memory_space<vmem>>, vector<1x128xf32>,
    return
  }
  func.func @transform_0(%arg0: i32) -> i32 {
    %c0_i32 = arith.constant 0 : i32
    %c0_i32_0 = arith.constant 0 : i32
    return %c0_i32 : i32
  }
  func.func @transform_1(%arg0: i32) -> i32 {
    %c0_i32 = arith.constant 0 : i32
    %c0_i32_0 = arith.constant 0 : i32
    return %c0_i32 : i32
  }
  func.func @transform_2(%arg0: i32) -> i32 {
    %c0_i32 = arith.constant 0 : i32
    %c0_i32_0 = arith.constant 0 : i32
    return %c0_i32 : i32
  }
  func.func @transform_3(%arg0: i32) -> (i32, i32) {
    %c0_i32 = arith.constant 0 : i32
    %c0_i32_0 = arith.constant 0 : i32
    %c0_i32_1 = arith.constant 0 : i32
    return %c0_i32, %c0_i32_0 : i32, i32
  }
  func.func @transform_4(%arg0: i32) -> (i32, i32) {
    %c0_i32 = arith.constant 0 : i32
    %c0_i32_0 = arith.constant 0 : i32
    %c0_i32_1 = arith.constant 0 : i32
    return %c0_i32, %c0_i32_0 : i32, i32
  }
  func.func @transform_5(%arg0: i32) -> (i32, i32) {
    %c0_i32 = arith.constant 0 : i32
    %c0_i32_0 = arith.constant 0 : i32
    %c0_i32_1 = arith.constant 0 : i32
    return %c0_i32, %c0_i32_0 : i32, i32
  }
  func.func @transform_6(%arg0: i32) -> (i32, i32) {
    %c0_i32 = arith.constant 0 : i32
    %c0_i32_0 = arith.constant 0 : i32
    %c0_i32_1 = arith.constant 0 : i32
    return %c0_i32, %c0_i32_0 : i32, i32
  }
  func.func @transform_7(%arg0: i32) -> (i32, i32) {
    %c0_i32 = arith.constant 0 : i32
    %c0_i32_0 = arith.constant 0 : i32
    %c0_i32_1 = arith.constant 0 : i32
    return %c0_i32, %c0_i32_0 : i32, i32
  }
  func.func @transform_8(%arg0: i32) -> (i32, i32) {
    %c0_i32 = arith.constant 0 : i32
    %c0_i32_0 = arith.constant 0 : i32
    %c0_i32_1 = arith.constant 0 : i32
    return %c0_i32, %c0_i32_0 : i32, i32
  }
  func.func @transform_9(%arg0: i32) -> (i32, i32) {
    %c0_i32 = arith.constant 0 : i32
    %c0_i32_0 = arith.constant 0 : i32
    %c0_i32_1 = arith.constant 0 : i32
    return %c0_i32, %c0_i32_0 : i32, i32
  }
  func.func @transform_10(%arg0: i32) -> (i32, i32) {
    %c0_i32 = arith.constant 0 : i32
    %c0_i32_0 = arith.constant 0 : i32
    %c0_i32_1 = arith.constant 0 : i32
    return %c0_i32, %c0_i32_0 : i32, i32
  }
  func.func @transform_11(%arg0: i32) -> (i32, i32) {
    %c0_i32 = arith.constant 0 : i32
    %c0_i32_0 = arith.constant 0 : i32
    %c0_i32_1 = arith.constant 0 : i32
    return %c0_i32, %c0_i32_0 : i32, i32
  }
  func.func @transform_12(%arg0: i32) -> (i32, i32) {
    %c0_i32 = arith.constant 0 : i32
    %c0_i32_0 = arith.constant 0 : i32
    %c0_i32_1 = arith.constant 0 : i32
    return %c0_i32, %c0_i32_0 : i32, i32
  }
  func.func @transform_13(%arg0: i32) -> (i32, i32) {
    %c0_i32 = arith.constant 0 : i32
    %c0_i32_0 = arith.constant 0 : i32
    %c0_i32_1 = arith.constant 0 : i32
    return %c0_i32, %c0_i32_0 : i32, i32
  }
}

</mosaic_0001>

<bundles_post_ra>
// kernel: tpu_custom_call.1
= control target key start
LH: loop header
LB: loop body
LE: loop exit
PB: predicated region body
PF: predicated region fallthrough
CT: control target
= control target key end

     0   :  { %18 = vsyncpa [#allocation4], 0  ;;  %s4956_s0 = inlined_call_operand.vmem [shape: f32[2], index: 0, kind: input, shape index: {}]   ;;  %s4957_s1 = inlined_call_operand.vmem [shape: s32[4], index: 1, kind: input, shape index: {}]   ;;  %s4958_s2 = inlined_call_operand.vmem [shape: s32[4], index: 2, kind: input, shape index: {}]   ;;  %s4959_s3 = inlined_call_operand.vmem [shape: bf16[4,1024], index: 3, kind: input, shape index: {}]   ;;  %s4960_s4 = inlined_call_operand.vmem [shape: bf16[4,1024], index: 4, kind: input, shape index: {}]   ;;  %s4961_s5 = inlined_call_operand.vmem [shape: bf16[4,1024], index: 5, kind: input, shape index: {}]   ;;  %s4962_s6 = inlined_call_operand.vmem [shape: bf16[4,1024], index: 6, kind: input, shape index: {}]   ;;  %s4963_s7 = inlined_call_operand.vmem [shape: bf16[8,1024], index: 7, kind: input, shape index: {}]   ;;  %s4964_s8 = inlined_call_operand.vmem [shape: bf16[8,1024], index: 8, kind: input, shape index: {}]   ;;  %s4965_s9 = inlined_call_operand.vmem [shape: bf16[1024,32], index: 9, kind: input, shape index: {}]   ;;  %s4966_s10 = inlined_call_operand.vmem [shape: f32[1,32], index: 10, kind: input, shape index: {}]   ;;  %s4967_s11 = inlined_call_operand.vmem [shape: f32[32,8], index: 11, kind: input, shape index: {}]   ;;  %s4968_s12 = inlined_call_operand.vmem [shape: f32[1,8], index: 12, kind: input, shape index: {}]   ;;  %s4969_s13 = inlined_call_operand.hbm [shape: f32[1,128], index: 13, kind: output, shape index: {}]  }
   0x1   :  { %19 = vsyncpa [#allocation6], 0  ;;  %s37_s27 = sshll.u32 %s4957_s1, 4  ;;  %s38_s27 = int_to_ptr.vmem [resolvable:$true] %s37_s27 }
   0x2   :  { %20 = vsyncpa [#allocation3], 0  ;;  %s27_s30 = sshll.u32 %s4956_s0, 4  ;;  %s3481_s14 = scalar_lea.vmem %s38_s27, 16  ;;  %s28_s30 = int_to_ptr.vmem [resolvable:$true] %s27_s30 }
   0x3   :  { %p3482_p0 = scmp.ne.s32.totalorder %s38_s27, %s3481_s14  ;;  %p3486_p1 = scmp.lt.s32.totalorder %s38_s27, %s38_s27 }
   0x4   :  { %p3487_p2 = scmp.lt.s32.totalorder %s3481_s14, %s3481_s14 }
   0x6   :  { %p3488_p3 = por %p3487_p2, %p3486_p1 }
   0x8   :  { %p3489_p4 = pnand %p3488_p3, %p3482_p0 }
   0xa   :  { %3492 = shalt.err (!%p3489_p4)
}
   0xb   :  { %s3543_s15 = smov [#allocation5]   ;;  %s3493_s16 = scalar_lea.vmem %s28_s30, 16 }
   0xc   :  { %40 = dma.vmem_to_smem %s38_s27, 16, %s3543_s15, [#allocation6]  }
   0xd   :  { %p3494_p5 = scmp.ne.s32.totalorder %s28_s30, %s3493_s16  ;;  %p3498_p6 = scmp.lt.s32.totalorder %s28_s30, %s28_s30 }
   0xe   :  { %p3499_p7 = scmp.lt.s32.totalorder %s3493_s16, %s3493_s16 }
  0x10   :  { %p3500_p8 = por %p3499_p7, %p3498_p6 }
  0x12   :  { %p3501_p9 = pnand %p3500_p8, %p3494_p5 }
  0x14   :  { %3504 = shalt.err (!%p3501_p9)
}
  0x15   :  { %s3544_s1 = smov [#allocation2]   ;;  %s47_s18 = sshll.u32 %s4958_s2, 4  ;;  %s48_s18 = int_to_ptr.vmem [resolvable:$true] %s47_s18 }
  0x16   :  { %30 = dma.vmem_to_smem %s28_s30, 16, %s3544_s1, [#allocation4]  }
  0x17   :  { %s3505_s19 = scalar_lea.vmem %s48_s18, 16  ;;  %p3510_p11 = scmp.lt.s32.totalorder %s48_s18, %s48_s18 }
  0x18   :  { %p3506_p10 = scmp.ne.s32.totalorder %s48_s18, %s3505_s19  ;;  %p3511_p12 = scmp.lt.s32.totalorder %s3505_s19, %s3505_s19 }
  0x1a   :  { %p3512_p13 = por %p3511_p12, %p3510_p11 }
  0x1c   :  { %p3513_p0 = pnand %p3512_p13, %p3506_p10 }
  0x1e   :  { %3516 = shalt.err (!%p3513_p0)
}
  0x1f   :  { %s3545_s20 = smov [#allocation7]  }
  0x20   :  { %50 = dma.vmem_to_smem %s48_s18, 16, %s3545_s20, [#allocation6]  }
  0x21   :  { %3537 = dma.done.wait [#allocation4], 16  }
  0x22   :  { %3538 = vsyncadd [#allocation4], 4294967280 }
  0x23   :  { %3539 = dma.done.wait [#allocation6], 32  }
  0x24   :  { %3540 = vsyncadd [#allocation6], 4294967264 }
  0x25   :  { %80 = sfence }
  0x26   :  { %v3632_v0 = vld [vmem:[%s4965_s9 + $0x78] sm:$0xff]   ;;  %v3655_v4 = vld [vmem:[%s4965_s9 + $0x70] sm:$0xff]   ;;  %v3679_v8 = vld [vmem:[%s4965_s9 + $0x68] sm:$0xff]   ;;  %v4970_v28 = vlaneseq  ;;  %v3546_v36 = vmov 1983009808   ;;  %vm3548_vm0 = vmmov 0  }
  0x27   :  { %v3637_v1 = vld [vmem:[%s4965_s9 + $0xf8] sm:$0xff]   ;;  %2661 = vmatprep.subr.bf16.mxu0 %v3632_v0  ;;  %v3661_v5 = vld [vmem:[%s4965_s9 + $0xf0] sm:$0xff]   ;;  %v3685_v9 = vld [vmem:[%s4965_s9 + $0xe8] sm:$0xff]   ;;  %v230_v37 = vunpack.c.l.s4 %v3546_v36  ;;  %vm821_vm1 = vcmask 261120   ;;  %vm2305_vm2 = vcmask 60416   ;;  %vm2448_vm3 = vcmask 64512  }
  0x28   :  { %5034 = vst [vmem:[#allocation12_spill] sm:$0xff] %v3637_v1  ;;  %v3643_v2 = vld [vmem:[%s4965_s9 + $0x38] sm:$0xff]   ;;  %2683 = vmatprep.subr.bf16.mxu1 %v3637_v1  ;;  %v3667_v6 = vld [vmem:[%s4965_s9 + $0x30] sm:$0xff]   ;;  %v3691_v10 = vld [vmem:[%s4965_s9 + $0x28] sm:$0xff]   ;;  %v3820_v33 = vshrl.u32 %v4970_v28, 7  ;;  %s2655_s29 = sld [smem:[#allocation7 + $0x1]] }
  0x29   :  { %v3649_v3 = vld [vmem:[%s4965_s9 + $0xb8] sm:$0xff]   ;;  %2662 = vmatpush3.bf16.msra.mxu0 %v3643_v2  ;;  %v3673_v7 = vld [vmem:[%s4965_s9 + $0xb0] sm:$0xff]   ;;  %v3697_v11 = vld [vmem:[%s4965_s9 + $0xa8] sm:$0xff]   ;;  %v231_v39 = vunpack.c.0.s8 %v230_v37  ;;  %s2656_s30 = sld [smem:[#allocation7 + $0x2]]  ;;  %vm2335_vm13 = vcmask 1043456   ;;  %s3549_s19 = smov [#allocation8]  }
  0x2a   :  { %2684 = vmatpush3.bf16.msra.mxu1 %v3649_v3  ;;  %2663 = vmatprep.subr.bf16.mxu0 %v3655_v4  ;;  %v3703_v12 = vld [vmem:[%s4965_s9 + $0x60] sm:$0xff]   ;;  %v3727_v16 = vld [vmem:[%s4965_s9 + $0x58] sm:$0xff]   ;;  %v3751_v20 = vld [vmem:[%s4965_s9 + $0x50] sm:$0xff]   ;;  %5037 = vst [vmem:[#allocation15_spill] sm:$0xff] %v3820_v33  ;;  %s2657_s14 = sld [smem:[#allocation7 + $0x3]]  ;;  %s2552_s20 = sshll.u32 %s3549_s19, 4  ;;  %s2553_s20 = int_to_ptr.vmem [resolvable:$true] %s2552_s20 }
  0x2b   :  { %2685 = vmatprep.subr.bf16.mxu1 %v3661_v5  ;;  %v3709_v13 = vld [vmem:[%s4965_s9 + $0xe0] sm:$0xff]   ;;  %v3733_v17 = vld [vmem:[%s4965_s9 + $0xd8] sm:$0xff]   ;;  %v3757_v21 = vld [vmem:[%s4965_s9 + $0xd0] sm:$0xff]   ;;  %v3840_v41 = vsub.s32 %v231_v39, %v3820_v33  ;;  %s2270_s15 = sld [smem:[#allocation5]]  ;;  %s3521_s21 = scalar_lea.vmem %s2553_s20, 32 }
  0x2c   :  { %v3715_v14 = vld [vmem:[%s4965_s9 + $0x20] sm:$0xff]   ;;  %v3739_v18 = vld [vmem:[%s4965_s9 + $0x18] sm:$0xff]   ;;  %v3763_v22 = vld [vmem:[%s4965_s9 + $0x10] sm:$0xff]   ;;  %s2651_s16 = sld [smem:[#allocation5 + $0x1]]  ;;  %p3522_p2 = scmp.lt.s32.totalorder %s2553_s20, %s2553_s20 }
  0x2d   :  { %2664 = vmatpush3.bf16.msra.mxu0 %v3667_v6  ;;  %v3721_v15 = vld [vmem:[%s4965_s9 + $0xa0] sm:$0xff]   ;;  %v3745_v19 = vld [vmem:[%s4965_s9 + $0x98] sm:$0xff]   ;;  %v3769_v23 = vld [vmem:[%s4965_s9 + $0x90] sm:$0xff]   ;;  %s2652_s1 = sld [smem:[#allocation5 + $0x2]] }
  0x2e   :  { %2686 = vmatpush3.bf16.msra.mxu1 %v3673_v7  ;;  %2665 = vmatprep.subr.bf16.mxu0 %v3679_v8  ;;  %v3775_v24 = vld [vmem:[%s4965_s9 + $0x48] sm:$0xff]   ;;  %v3799_v29 = vld [vmem:[%s4965_s9 + $0x40] sm:$0xff]   ;;  %v3829_v35 = vld [vmem:[%s4965_s9 + $0x178] sm:$0xff]   ;;  %s2653_s0 = sld [smem:[#allocation5 + $0x3]] }
  0x2f   :  { %2687 = vmatprep.subr.bf16.mxu1 %v3685_v9  ;;  %v3781_v25 = vld [vmem:[%s4965_s9 + $0xc8] sm:$0xff]   ;;  %5035 = vst [vmem:[#allocation13_spill] sm:$0xff] %v3799_v29  ;;  %v3805_v30 = vld [vmem:[%s4965_s9 + $0xc0] sm:$0xff]   ;;  %5038 = vst [vmem:[#allocation16_spill] sm:$0xff] %v3829_v35  ;;  %s82_s17 = sld [smem:[#allocation2]] }
  0x30   :  { %v3787_v26 = vld [vmem:[%s4965_s9 + $0x8] sm:$0xff]   ;;  %v3811_v31 = vld [vmem:[%s4965_s9] sm:$0xff]   ;;  %v3836_v38 = vld [vmem:[%s4965_s9 + $0x1f8] sm:$0xff]   ;;  %s2562_s18 = sld [smem:[#allocation2 + $0x1]] }
  0x31   :  { %2666 = vmatpush3.bf16.msra.mxu0 %v3691_v10  ;;  %v3793_v27 = vld [vmem:[%s4965_s9 + $0x88] sm:$0xff]   ;;  %5036 = vst [vmem:[#allocation14_spill] sm:$0xff] %v3811_v31  ;;  %v3817_v32 = vld [vmem:[%s4965_s9 + $0x80] sm:$0xff]   ;;  %v3847_v44 = vld [vmem:[%s4965_s9 + $0x138] sm:$0xff]  }
  0x32   :  { %2688 = vmatpush3.bf16.msra.mxu1 %v3697_v11  ;;  %2667 = vmatprep.subr.bf16.mxu0 %v3703_v12  ;;  %v218_v34 = vld [vmem:[%s4959_s3] sm:$0xff]  ;;  %5039 = vst [vmem:[#allocation17_spill] sm:$0xff] %v3847_v44  ;;  %v3852_v45 = vld [vmem:[%s4965_s9 + $0x1b8] sm:$0xff]   ;;  %v3857_v48 = vld [vmem:[%s4965_s9 + $0x170] sm:$0xff]  }
  0x33   :  { %2689 = vmatprep.subr.bf16.mxu1 %v3709_v13  ;;  %v228_v40 = vcombine.high %v218_v34, %v218_v34  ;;  %v235_v42 = vrot.slane %v218_v34, %v3840_v41  ;;  %5040 = vst [vmem:[#allocation18_spill] sm:$0xff] %v3857_v48  ;;  %v3862_v49 = vld [vmem:[%s4965_s9 + $0x1f0] sm:$0xff]   ;;  %v3879_v52 = vld [vmem:[%s4965_s9 + $0x168] sm:$0xff]   ;;  %v3903_v56 = vld [vmem:[%s4965_s9 + $0x160] sm:$0xff]  }
  0x34   :  { %v3867_v50 = vld [vmem:[%s4965_s9 + $0x130] sm:$0xff]   ;;  %5042 = vst [vmem:[#allocation20_spill] sm:$0xff] %v3879_v52  ;;  %v3886_v53 = vld [vmem:[%s4965_s9 + $0x1e8] sm:$0xff]   ;;  %5044 = vst [vmem:[#allocation22_spill] sm:$0xff] %v3903_v56 }
  0x35   :  { %2668 = vmatpush3.bf16.msra.mxu0 %v3715_v14  ;;  %v242_v43 = vrot.slane %v228_v40, %v3840_v41  ;;  %v243_v46 = vcombine.high %v235_v42, %v235_v42  ;;  %5041 = vst [vmem:[#allocation19_spill] sm:$0xff] %v3867_v50  ;;  %v3872_v51 = vld [vmem:[%s4965_s9 + $0x1b0] sm:$0xff]   ;;  %v3891_v54 = vld [vmem:[%s4965_s9 + $0x128] sm:$0xff]   ;;  %v3910_v57 = vld [vmem:[%s4965_s9 + $0x1e0] sm:$0xff]  }
  0x36   :  { %2690 = vmatpush3.bf16.msra.mxu1 %v3721_v15  ;;  %2669 = vmatprep.subr.bf16.mxu0 %v3727_v16  ;;  %5043 = vst [vmem:[#allocation21_spill] sm:$0xff] %v3891_v54  ;;  %v3896_v55 = vld [vmem:[%s4965_s9 + $0x1a8] sm:$0xff]   ;;  %v3915_v58 = vld [vmem:[%s4965_s9 + $0x120] sm:$0xff]   ;;  %v3927_v60 = vld [vmem:[%s4965_s9 + $0x158] sm:$0xff]  }
  0x37   :  { %2691 = vmatprep.subr.bf16.mxu1 %v3733_v17  ;;  %v244_v47 = vcombine.high %v242_v43, %v242_v43  ;;  %686 = vmatprep.mubr.bf16.mxu0 %v243_v46  ;;  %5045 = vst [vmem:[#allocation23_spill] sm:$0xff] %v3915_v58  ;;  %v3920_v59 = vld [vmem:[%s4965_s9 + $0x1a0] sm:$0xff]   ;;  %5047 = vst [vmem:[#allocation25_spill] sm:$0xff] %v3927_v60  ;;  %v3934_v61 = vld [vmem:[%s4965_s9 + $0x1d8] sm:$0xff]  }
  0x38   :  { %5046 = vst [vmem:[#allocation24_spill] sm:$0xff] %v3920_v59  ;;  %5048 = vst [vmem:[#allocation26_spill] sm:$0xff] %v3934_v61  ;;  %v3939_v62 = vld [vmem:[%s4965_s9 + $0x118] sm:$0xff]   ;;  %v3951_v34 = vld [vmem:[%s4965_s9 + $0x150] sm:$0xff]  }
  0x39   :  { %2670 = vmatpush3.bf16.msra.mxu0 %v3739_v18  ;;  %726 = vmatprep.mubr.bf16.mxu1 %v244_v47  ;;  %5049 = vst [vmem:[#allocation27_spill] sm:$0xff] %v3939_v62  ;;  %v3944_v63 = vld [vmem:[%s4965_s9 + $0x198] sm:$0xff]   ;;  %5051 = vst [vmem:[#allocation29_spill] sm:$0xff] %v3951_v34  ;;  %v3958_v36 = vld [vmem:[%s4965_s9 + $0x1d0] sm:$0xff]  }
  0x3a   :  { %2692 = vmatpush3.bf16.msra.mxu1 %v3745_v19  ;;  %2671 = vmatprep.subr.bf16.mxu0 %v3751_v20  ;;  %5050 = vst [vmem:[#allocation28_spill] sm:$0xff] %v3944_v63  ;;  %5052 = vst [vmem:[#allocation30_spill] sm:$0xff] %v3958_v36  ;;  %v3963_v37 = vld [vmem:[%s4965_s9 + $0x110] sm:$0xff]   ;;  %v3975_v40 = vld [vmem:[%s4965_s9 + $0x148] sm:$0xff]  }
  0x3b   :  { %2693 = vmatprep.subr.bf16.mxu1 %v3757_v21  ;;  %5053 = vst [vmem:[#allocation31_spill] sm:$0xff] %v3963_v37  ;;  %v3968_v39 = vld [vmem:[%s4965_s9 + $0x190] sm:$0xff]   ;;  %5055 = vst [vmem:[#allocation33_spill] sm:$0xff] %v3975_v40  ;;  %v3992_v46 = vld [vmem:[%s4965_s9 + $0x108] sm:$0xff]  }
  0x3c   :  { %5054 = vst [vmem:[#allocation32_spill] sm:$0xff] %v3968_v39  ;;  %5057 = vst [vmem:[#allocation35_spill] sm:$0xff] %v3992_v46  ;;  %v3997_v47 = vld [vmem:[%s4965_s9 + $0x188] sm:$0xff]  }
  0x3d   :  { %2672 = vmatpush3.bf16.msra.mxu0 %v3763_v22 }
  0x3e   :  { %2694 = vmatpush3.bf16.msra.mxu1 %v3769_v23  ;;  %2673 = vmatprep.subr.bf16.mxu0 %v3775_v24 }
  0x3f   :  { %2695 = vmatprep.subr.bf16.mxu1 %v3781_v25 }
  0x41   :  { %2674 = vmatpush3.bf16.msra.mxu0 %v3787_v26 }
  0x42   :  { %2696 = vmatpush3.bf16.msra.mxu1 %v3793_v27  ;;  %2675 = vmatprep.subr.bf16.mxu0 %v3799_v29 }
  0x43   :  { %2697 = vmatprep.subr.bf16.mxu1 %v3805_v30 }
  0x45   :  { %2676 = vmatpush3.bf16.msra.mxu0 %v3811_v31 }
  0x46   :  { %2698 = vmatpush3.bf16.msra.mxu1 %v3817_v32  ;;  %2705 = vmatprep.subr.bf16.mxu0 %v3829_v35 }
  0x47   :  { %2727 = vmatprep.subr.bf16.mxu1 %v3836_v38 }
  0x48   :  { %687 = vmatmul.mubr.bf16.vlgmr.msra.gmra.mxu0 %v235_v42  ;;  %v3982_v42 = vld [vmem:[%s4965_s9 + $0x1c8] sm:$0xff]  }
  0x49   :  { %727 = vmatmul.mubr.bf16.vlgmr.msra.gmra.mxu1 %v242_v43  ;;  %2706 = vmatpush3.bf16.msra.mxu0 %v3847_v44  ;;  %5056 = vst [vmem:[#allocation34_spill] sm:$0xff] %v3982_v42  ;;  %v219_v43 = vld [vmem:[%s4959_s3 + $0x8] sm:$0xff] }
  0x4a   :  { %2728 = vmatpush3.bf16.msra.mxu1 %v3852_v45  ;;  %2707 = vmatprep.subr.bf16.mxu0 %v3857_v48  ;;  %v252_v28 = vrot.slane %v219_v43, %v3840_v41  ;;  %v245_v33 = vcombine.high %v219_v43, %v219_v43  ;;  %v4018_v43 = vld [vmem:[%s4965_s9 + $0x100] sm:$0xff]  }
  0x4b   :  { %2729 = vmatprep.subr.bf16.mxu1 %v3862_v49  ;;  %5059 = vst [vmem:[#allocation37_spill] sm:$0xff] %v4018_v43 }
  0x4d   :  { %2708 = vmatpush3.bf16.msra.mxu0 %v3867_v50 }
  0x4e   :  { %2730 = vmatpush3.bf16.msra.mxu1 %v3872_v51  ;;  %2709 = vmatprep.subr.bf16.mxu0 %v3879_v52 }
  0x4f   :  { %2731 = vmatprep.subr.bf16.mxu1 %v3886_v53 }
  0x51   :  { %2710 = vmatpush3.bf16.msra.mxu0 %v3891_v54 }
  0x52   :  { %2732 = vmatpush3.bf16.msra.mxu1 %v3896_v55  ;;  %2711 = vmatprep.subr.bf16.mxu0 %v3903_v56 }
  0x53   :  { %2733 = vmatprep.subr.bf16.mxu1 %v3910_v57 }
  0x55   :  { %2712 = vmatpush3.bf16.msra.mxu0 %v3915_v58 }
  0x56   :  { %2734 = vmatpush3.bf16.msra.mxu1 %v3920_v59  ;;  %2713 = vmatprep.subr.bf16.mxu0 %v3927_v60 }
  0x57   :  { %2735 = vmatprep.subr.bf16.mxu1 %v3934_v61  ;;  %v259_v61 = vrot.slane %v245_v33, %v3840_v41  ;;  %v4050_v33 = vld [vmem:[%s4967_s11 + $0x18] sm:$0xff] }
  0x58   :  { %5060 = vst [vmem:[#allocation38_spill] sm:$0xff] %v4050_v33 }
  0x59   :  { %2714 = vmatpush3.bf16.msra.mxu0 %v3939_v62  ;;  %v261_v59 = vcombine.high %v259_v61, %v259_v61 }
  0x5a   :  { %2736 = vmatpush3.bf16.msra.mxu1 %v3944_v63  ;;  %2715 = vmatprep.subr.bf16.mxu0 %v3951_v34  ;;  %v260_v63 = vcombine.high %v252_v28, %v252_v28 }
  0x5b   :  { %2737 = vmatprep.subr.bf16.mxu1 %v3958_v36  ;;  %v4010_v36 = vld [vmem:[%s4965_s9 + $0x1c0] sm:$0xff]   ;;  %806 = vmatprep.mubr.bf16.mxu1 %v261_v59  ;;  %v4057_v59 = vld [vmem:[%s4967_s11 + $0x10] sm:$0xff] }
  0x5c   :  { %766 = vmatprep.mubr.bf16.mxu0 %v260_v63  ;;  %5061 = vst [vmem:[#allocation39_spill] sm:$0xff] %v4057_v59  ;;  %v4071_v63 = vld [vmem:[%s4967_s11] sm:$0xff] }
  0x5d   :  { %2716 = vmatpush3.bf16.msra.mxu0 %v3963_v37  ;;  %5063 = vst [vmem:[#allocation41_spill] sm:$0xff] %v4071_v63 }
  0x5e   :  { %2738 = vmatpush3.bf16.msra.mxu1 %v3968_v39  ;;  %2717 = vmatprep.subr.bf16.mxu0 %v3975_v40  ;;  %v4005_v39 = vld [vmem:[%s4965_s9 + $0x140] sm:$0xff]  }
  0x5f   :  { %2739 = vmatprep.subr.bf16.mxu1 %v3982_v42  ;;  %5058 = vst [vmem:[#allocation36_spill] sm:$0xff] %v4005_v39  ;;  %v4023_v42 = vld [vmem:[%s4965_s9 + $0x180] sm:$0xff]  }
  0x61   :  { %2718 = vmatpush3.bf16.msra.mxu0 %v3992_v46 }
  0x62   :  { %2740 = vmatpush3.bf16.msra.mxu1 %v3997_v47  ;;  %2719 = vmatprep.subr.bf16.mxu0 %v4005_v39 }
  0x63   :  { %2741 = vmatprep.subr.bf16.mxu1 %v4010_v36 }
  0x65   :  { %2720 = vmatpush3.bf16.msra.mxu0 %v4018_v43 }
  0x66   :  { %2742 = vmatpush3.bf16.msra.mxu1 %v4023_v42 }
  0x67   :  { %2754 = vmatprep.subr.bf16.mxu1 %v3632_v0 }
  0x68   :  { %767 = vmatmul.mubr.bf16.vlgmr.msra.gmra.mxu0 %v252_v28  ;;  %v4991_v28 = vmov 0.0  }
  0x69   :  { %807 = vmatmul.mubr.bf16.vlgmr.msra.gmra.mxu1 %v259_v61  ;;  %3219 = vmatprep.subr.mxu0 %v4991_v28  ;;  %v4064_v61 = vld [vmem:[%s4967_s11 + $0x8] sm:$0xff] }
  0x6a   :  { %2755 = vmatpush3.bf16.msra.mxu1 %v3643_v2  ;;  %3220 = vmatpush3.msra.mxu0 %v4050_v33  ;;  %5062 = vst [vmem:[#allocation40_spill] sm:$0xff] %v4064_v61 }
  0x6b   :  { %2756 = vmatprep.subr.bf16.mxu1 %v3655_v4  ;;  %3221 = vmatprep.subr.mxu0 %v4991_v28 }
  0x6c   :  { %3222 = vmatpush3.msra.mxu0 %v4057_v59  ;;  %3227 = vmatprep.mubr.msk.f32.mxu0 %vm3548_vm0, %v4991_v28 }
  0x6d   :  { %3223 = vmatprep.subr.mxu0 %v4991_v28 }
  0x6e   :  { %2757 = vmatpush3.bf16.msra.mxu1 %v3667_v6  ;;  %3224 = vmatpush3.msra.mxu0 %v4064_v61 }
  0x6f   :  { %2758 = vmatprep.subr.bf16.mxu1 %v3679_v8  ;;  %3225 = vmatprep.subr.mxu0 %v4991_v28 }
  0x70   :  { %3226 = vmatpush3.msra.mxu0 %v4071_v63 }
  0x71   :  { %2776 = vmatprep.subr.bf16.mxu0 %v3637_v1 }
  0x72   :  { %2759 = vmatpush3.bf16.msra.mxu1 %v3691_v10 }
  0x73   :  { %2760 = vmatprep.subr.bf16.mxu1 %v3703_v12 }
  0x76   :  { %2761 = vmatpush3.bf16.msra.mxu1 %v3715_v14 }
  0x77   :  { %2762 = vmatprep.subr.bf16.mxu1 %v3727_v16 }
  0x7a   :  { %2763 = vmatpush3.bf16.msra.mxu1 %v3739_v18 }
  0x7b   :  { %2764 = vmatprep.subr.bf16.mxu1 %v3751_v20 }
  0x7e   :  { %2765 = vmatpush3.bf16.msra.mxu1 %v3763_v22 }
  0x7f   :  { %2766 = vmatprep.subr.bf16.mxu1 %v3775_v24 }
  0x82   :  { %2767 = vmatpush3.bf16.msra.mxu1 %v3787_v26 }
  0x83   :  { %2768 = vmatprep.subr.bf16.mxu1 %v3799_v29 }
  0x86   :  { %2769 = vmatpush3.bf16.msra.mxu1 %v3811_v31 }
  0x87   :  { %2798 = vmatprep.subr.bf16.mxu1 %v3829_v35  ;;  %v895_v35 = vld [vmem:[%s4960_s4] sm:$0xff] }
  0x88   :  { %v906_v31 = vrot.slane %v895_v35, %v3840_v41 }
  0x8a   :  { %v914_v29 = vcombine.high %v906_v31, %v906_v31 }
  0x8c   :  { %973 = vmatprep.mubr.bf16.mxu1 %v914_v29  ;;  %v4097_v29 = vld [vmem:[%s4960_s4 + $0x8] sm:$0xff] }
  0x8d   :  { %974 = vmatmul.mubr.bf16.vlgmr.msra.gmra.mxu1 %v906_v31  ;;  %v923_v31 = vrot.slane %v4097_v29, %v3840_v41 }
  0x8e   :  { %2799 = vmatpush3.bf16.msra.mxu1 %v3847_v44 }
  0x8f   :  { %2800 = vmatprep.subr.bf16.mxu1 %v3857_v48  ;;  %v931_v28 = vcombine.high %v923_v31, %v923_v31 }
  0x91   :  { %1053 = vmatprep.mubr.bf16.mxu1 %v931_v28 }
  0x92   :  { %2801 = vmatpush3.bf16.msra.mxu1 %v3867_v50 }
  0x93   :  { %2802 = vmatprep.subr.bf16.mxu1 %v3879_v52 }
  0x96   :  { %2803 = vmatpush3.bf16.msra.mxu1 %v3891_v54 }
  0x97   :  { %2804 = vmatprep.subr.bf16.mxu1 %v3903_v56 }
  0x9a   :  { %2805 = vmatpush3.bf16.msra.mxu1 %v3915_v58 }
  0x9b   :  { %2806 = vmatprep.subr.bf16.mxu1 %v3927_v60 }
  0x9e   :  { %2807 = vmatpush3.bf16.msra.mxu1 %v3939_v62 }
  0x9f   :  { %2808 = vmatprep.subr.bf16.mxu1 %v3951_v34  ;;  %v5064_v34 = vmov 0.0  }
  0xa2   :  { %2809 = vmatpush3.bf16.msra.mxu1 %v3963_v37 }
  0xa3   :  { %2810 = vmatprep.subr.bf16.mxu1 %v3975_v40 }
  0xa6   :  { %2811 = vmatpush3.bf16.msra.mxu1 %v3992_v46 }
  0xa7   :  { %2812 = vmatprep.subr.bf16.mxu1 %v4005_v39 }
  0xaa   :  { %2813 = vmatpush3.bf16.msra.mxu1 %v4018_v43 }
  0xab   :  { %3230 = vmatprep.subr.mxu1 %v5064_v34 }
  0xad   :  { %1054 = vmatmul.mubr.bf16.vlgmr.msra.gmra.mxu1 %v923_v31 }
  0xae   :  { %3231 = vmatpush3.msra.mxu1 %v4050_v33  ;;  %3238 = vmatprep.mubr.msk.f32.mxu1 %vm3548_vm0, %v5064_v34 }
  0xaf   :  { %3232 = vmatprep.subr.mxu1 %v5064_v34 }
  0xb0   :  { %3233 = vmatpush3.msra.mxu1 %v4057_v59  ;;  %v4117_v59 = vld [vmem:[%s4966_s10] ss:$0 sm:$0xff] }
  0xb1   :  { %3234 = vmatprep.subr.mxu1 %v5064_v34 }
  0xb2   :  { %3235 = vmatpush3.msra.mxu1 %v4064_v61 }
  0xb3   :  { %3236 = vmatprep.subr.mxu1 %v5064_v34 }
  0xb4   :  { %3237 = vmatpush3.msra.mxu1 %v4071_v63 }
  0xb5   :  { %2869 = vmatprep.subr.bf16.mxu1 %v3637_v1  ;;  %v899_v1 = vcombine.high %v895_v35, %v895_v35 }
 0x108   :  { %v2677_v28 = vpop.f32.mrf.mxu0 }
 0x109   :  { %v2699_v31 = vpop.f32.mrf.mxu1 }
 0x10a   :  { %v2678_v33 = vpop.f32.mrf.mxu0 }
 0x10b   :  { %v2700_v43 = vpop.f32.mrf.mxu1  ;;  %v2679_v62 = vadd.f32 %v2678_v33, %v2677_v28 }
 0x10c   :  { %v2680_v39 = vpop.f32.mrf.mxu0  ;;  %v2701_v34 = vadd.f32 %v2700_v43, %v2699_v31 }
 0x10d   :  { %v2702_v46 = vpop.f32.mrf.mxu1  ;;  %v689_v61 = vadd.f32 %v2679_v62, %v4117_v59 }
 0x10e   :  { %v2681_v40 = vpop.f32.mrf.mxu0 }
 0x10f   :  { %v2703_v37 = vpop.f32.mrf.mxu1  ;;  %v729_v54 = vadd.f32 %v2701_v34, %v689_v61 }
 0x110   :  { %v913_v37 = vrot.slane %v899_v1, %v3840_v41  ;;  %v916_v1 = vcombine.high %v4097_v29, %v4097_v29 }
 0x112   :  { %v915_v44 = vcombine.high %v913_v37, %v913_v37  ;;  %v930_v35 = vrot.slane %v916_v1, %v3840_v41  ;;  %v5077_v1 = vld [vmem:[#allocation20_spill] sm:$0xff] }
 0x128   :  { %v2721_v63 = vpop.f32.mrf.mxu0 }
 0x129   :  { %v2743_v60 = vpop.f32.mrf.mxu1 }
 0x12a   :  { %v2722_v58 = vpop.f32.mrf.mxu0 }
 0x12b   :  { %v2744_v56 = vpop.f32.mrf.mxu1  ;;  %v2723_v52 = vadd.f32 %v2722_v58, %v2721_v63  ;;  %v5070_v58 = vld [vmem:[#allocation34_spill] sm:$0xff] }
 0x12c   :  { %v2724_v39 = vpop.f32.mrf.mxu0  ;;  %v2745_v33 = vadd.f32 %v2744_v56, %v2743_v60  ;;  %v5069_v56 = vld [vmem:[#allocation32_spill] sm:$0xff] }
 0x12d   :  { %v2746_v46 = vpop.f32.mrf.mxu1  ;;  %v769_v40 = vadd.f32 %v2723_v52, %v729_v54  ;;  %v5067_v52 = vld [vmem:[#allocation28_spill] sm:$0xff]  ;;  %v5068_v54 = vld [vmem:[#allocation30_spill] sm:$0xff] }
 0x12e   :  { %v2725_v28 = vpop.f32.mrf.mxu0  ;;  %v1175_v46 = vld [vmem:[%s4961_s5] sm:$0xff] }
 0x12f   :  { %v2747_v50 = vpop.f32.mrf.mxu1  ;;  %v809_v48 = vadd.f32 %v2745_v33, %v769_v40  ;;  %v5074_v33 = vld [vmem:[#allocation17_spill] sm:$0xff]  ;;  %v5075_v28 = vld [vmem:[#allocation18_spill] sm:$0xff] }
 0x130   :  { %v5066_v50 = vld [vmem:[#allocation26_spill] sm:$0xff] }
 0x131   :  { %v814_v62 = vmax.f32 %v809_v48, 0.0  ;;  %v5065_v48 = vld [vmem:[#allocation24_spill] sm:$0xff] }
 0x133   :  { %3228 = vmatmul.mubr.msk.f32.vlgmr.msra.gmra.mxu0 %vm821_vm1, %v814_v62  ;;  %v5076_v62 = vld [vmem:[#allocation19_spill] sm:$0xff] }
 0x134   :  { %2777 = vmatpush3.bf16.msra.mxu0 %v3649_v3  ;;  %1013 = vmatprep.mubr.bf16.mxu0 %v915_v44  ;;  %v932_v44 = vcombine.high %v930_v35, %v930_v35 }
 0x135   :  { %2778 = vmatprep.subr.bf16.mxu0 %v3661_v5 }
 0x138   :  { %2779 = vmatpush3.bf16.msra.mxu0 %v3673_v7 }
 0x139   :  { %2780 = vmatprep.subr.bf16.mxu0 %v3685_v9 }
 0x13c   :  { %2781 = vmatpush3.bf16.msra.mxu0 %v3697_v11 }
 0x13d   :  { %2782 = vmatprep.subr.bf16.mxu0 %v3709_v13 }
 0x140   :  { %2783 = vmatpush3.bf16.msra.mxu0 %v3721_v15 }
 0x141   :  { %2784 = vmatprep.subr.bf16.mxu0 %v3733_v17 }
 0x144   :  { %2785 = vmatpush3.bf16.msra.mxu0 %v3745_v19 }
 0x145   :  { %2786 = vmatprep.subr.bf16.mxu0 %v3757_v21 }
 0x148   :  { %2787 = vmatpush3.bf16.msra.mxu0 %v3769_v23 }
 0x149   :  { %2788 = vmatprep.subr.bf16.mxu0 %v3781_v25 }
 0x14c   :  { %2789 = vmatpush3.bf16.msra.mxu0 %v3793_v27 }
 0x14d   :  { %2790 = vmatprep.subr.bf16.mxu0 %v3805_v30  ;;  %v2770_v60 = vpop.f32.mrf.mxu1 }
 0x14f   :  { %v2771_v34 = vpop.f32.mrf.mxu1 }
 0x150   :  { %2791 = vmatpush3.bf16.msra.mxu0 %v3817_v32  ;;  %v2772_v43 = vadd.f32 %v2771_v34, %v2770_v60  ;;  %v5080_v60 = vld [vmem:[#allocation23_spill] sm:$0xff]  ;;  %v5081_v34 = vld [vmem:[#allocation25_spill] sm:$0xff] }
 0x151   :  { %2820 = vmatprep.subr.bf16.mxu0 %v3836_v38  ;;  %v2773_v61 = vpop.f32.mrf.mxu1 }
 0x152   :  { %v5082_v61 = vld [vmem:[#allocation27_spill] sm:$0xff] }
 0x153   :  { %1014 = vmatmul.mubr.bf16.vlgmr.msra.gmra.mxu0 %v913_v37  ;;  %v2774_v63 = vpop.f32.mrf.mxu1  ;;  %v1186_v37 = vrot.slane %v1175_v46, %v3840_v41 }
 0x154   :  { %2821 = vmatpush3.bf16.msra.mxu0 %v3852_v45  ;;  %1093 = vmatprep.mubr.bf16.mxu0 %v932_v44  ;;  %v5079_v44 = vld [vmem:[#allocation22_spill] sm:$0xff]  ;;  %v5083_v63 = vld [vmem:[#allocation29_spill] sm:$0xff] }
 0x155   :  { %2822 = vmatprep.subr.bf16.mxu0 %v3862_v49  ;;  %v1194_v40 = vcombine.high %v1186_v37, %v1186_v37 }
 0x158   :  { %2823 = vmatpush3.bf16.msra.mxu0 %v3872_v51 }
 0x159   :  { %2824 = vmatprep.subr.bf16.mxu0 %v3886_v53 }
 0x15c   :  { %2825 = vmatpush3.bf16.msra.mxu0 %v3896_v55 }
 0x15d   :  { %2826 = vmatprep.subr.bf16.mxu0 %v3910_v57 }
 0x160   :  { %2827 = vmatpush3.bf16.msra.mxu0 %v5065_v48 }
 0x161   :  { %2828 = vmatprep.subr.bf16.mxu0 %v5066_v50 }
 0x164   :  { %2829 = vmatpush3.bf16.msra.mxu0 %v5067_v52 }
 0x165   :  { %2830 = vmatprep.subr.bf16.mxu0 %v5068_v54 }
 0x168   :  { %2831 = vmatpush3.bf16.msra.mxu0 %v5069_v56 }
 0x169   :  { %2832 = vmatprep.subr.bf16.mxu0 %v5070_v58 }
 0x16c   :  { %2833 = vmatpush3.bf16.msra.mxu0 %v3997_v47 }
 0x16d   :  { %2834 = vmatprep.subr.bf16.mxu0 %v4010_v36 }
 0x170   :  { %2835 = vmatpush3.bf16.msra.mxu0 %v4023_v42 }
 0x171   :  { %2847 = vmatprep.subr.bf16.mxu0 %v3632_v0  ;;  %v5071_v0 = vld [vmem:[#allocation13_spill] sm:$0xff] }
 0x173   :  { %1094 = vmatmul.mubr.bf16.vlgmr.msra.gmra.mxu0 %v930_v35  ;;  %v5078_v35 = vld [vmem:[#allocation21_spill] sm:$0xff] }
 0x174   :  { %2848 = vmatpush3.bf16.msra.mxu0 %v3643_v2  ;;  %v5072_v2 = vld [vmem:[#allocation14_spill] sm:$0xff]  ;;  %1253 = vmatprep.mubr.bf16.mxu0 %v1194_v40 }
 0x175   :  { %2849 = vmatprep.subr.bf16.mxu0 %v3655_v4  ;;  %v5073_v4 = vld [vmem:[#allocation16_spill] sm:$0xff] }
 0x178   :  { %2850 = vmatpush3.bf16.msra.mxu0 %v3667_v6  ;;  %v2814_v6 = vpop.f32.mrf.mxu1 }
 0x179   :  { %2851 = vmatprep.subr.bf16.mxu0 %v3679_v8 }
 0x17a   :  { %v2815_v8 = vpop.f32.mrf.mxu1 }
 0x17b   :  { %v2816_v29 = vadd.f32 %v2815_v8, %v2814_v6  ;;  %v5084_v6 = vld [vmem:[#allocation31_spill] sm:$0xff]  ;;  %v5085_v8 = vld [vmem:[#allocation33_spill] sm:$0xff] }
 0x17c   :  { %2852 = vmatpush3.bf16.msra.mxu0 %v3691_v10  ;;  %v2817_v31 = vpop.f32.mrf.mxu1 }
 0x17d   :  { %2853 = vmatprep.subr.bf16.mxu0 %v3703_v12  ;;  %v5086_v31 = vld [vmem:[#allocation35_spill] sm:$0xff] }
 0x17e   :  { %v2818_v39 = vpop.f32.mrf.mxu1 }
 0x17f   :  { %v1176_v39 = vld [vmem:[%s4961_s5 + $0x8] sm:$0xff] }
 0x180   :  { %2854 = vmatpush3.bf16.msra.mxu0 %v3715_v14  ;;  %v1203_v40 = vrot.slane %v1176_v39, %v3840_v41 }
 0x181   :  { %2855 = vmatprep.subr.bf16.mxu0 %v3727_v16 }
 0x184   :  { %2856 = vmatpush3.bf16.msra.mxu0 %v3739_v18 }
 0x185   :  { %2857 = vmatprep.subr.bf16.mxu0 %v3751_v20 }
 0x188   :  { %2858 = vmatpush3.bf16.msra.mxu0 %v3763_v22 }
 0x189   :  { %2859 = vmatprep.subr.bf16.mxu0 %v3775_v24 }
 0x18c   :  { %2860 = vmatpush3.bf16.msra.mxu0 %v3787_v26 }
 0x18d   :  { %2861 = vmatprep.subr.bf16.mxu0 %v5071_v0 }
 0x190   :  { %2862 = vmatpush3.bf16.msra.mxu0 %v5072_v2 }
 0x191   :  { %2891 = vmatprep.subr.bf16.mxu0 %v5073_v4 }
 0x193   :  { %1254 = vmatmul.mubr.bf16.vlgmr.msra.gmra.mxu0 %v1186_v37  ;;  %v5087_v37 = vld [vmem:[#allocation36_spill] sm:$0xff] }
 0x194   :  { %2892 = vmatpush3.bf16.msra.mxu0 %v5074_v33  ;;  %v1179_v33 = vcombine.high %v1175_v46, %v1175_v46  ;;  %v5104_v46 = vld [vmem:[#allocation22_spill] sm:$0xff] }
 0x195   :  { %2893 = vmatprep.subr.bf16.mxu0 %v5075_v28 }
 0x198   :  { %2894 = vmatpush3.bf16.msra.mxu0 %v5076_v62 }
 0x199   :  { %2895 = vmatprep.subr.bf16.mxu0 %v5077_v1 }
 0x19c   :  { %2896 = vmatpush3.bf16.msra.mxu0 %v5078_v35 }
 0x19d   :  { %2897 = vmatprep.subr.bf16.mxu0 %v5079_v44 }
 0x1a0   :  { %2898 = vmatpush3.bf16.msra.mxu0 %v5080_v60  ;;  %v1211_v60 = vcombine.high %v1203_v40, %v1203_v40 }
 0x1a1   :  { %2899 = vmatprep.subr.bf16.mxu0 %v5081_v34  ;;  %v5088_v34 = vld [vmem:[#allocation37_spill] sm:$0xff] }
 0x1a2   :  { %1333 = vmatprep.mubr.bf16.mxu0 %v1211_v60  ;;  %v5094_v60 = vld [vmem:[#allocation12_spill] sm:$0xff] }
 0x1a4   :  { %2900 = vmatpush3.bf16.msra.mxu0 %v5082_v61  ;;  %v5089_v61 = vmov 0.0  }
 0x1a5   :  { %2901 = vmatprep.subr.bf16.mxu0 %v5083_v63  ;;  %v976_v63 = vadd.f32 %v2772_v43, %v4117_v59 }
 0x1a8   :  { %2902 = vmatpush3.bf16.msra.mxu0 %v5084_v6  ;;  %v5090_v6 = vld [vmem:[#allocation38_spill] sm:$0xff] }
 0x1a9   :  { %2903 = vmatprep.subr.bf16.mxu0 %v5085_v8 }
 0x1ac   :  { %2904 = vmatpush3.bf16.msra.mxu0 %v5086_v31  ;;  %v5091_v31 = vld [vmem:[#allocation39_spill] sm:$0xff] }
 0x1ad   :  { %2905 = vmatprep.subr.bf16.mxu0 %v5087_v37  ;;  %v5092_v37 = vld [vmem:[#allocation40_spill] sm:$0xff] }
 0x1b0   :  { %2906 = vmatpush3.bf16.msra.mxu0 %v5088_v34  ;;  %v5093_v34 = vld [vmem:[#allocation41_spill] sm:$0xff] }
 0x1b1   :  { %3241 = vmatprep.subr.mxu0 %v5089_v61 }
 0x1b3   :  { %1334 = vmatmul.mubr.bf16.vlgmr.msra.gmra.mxu0 %v1203_v40 }
 0x1b4   :  { %3242 = vmatpush3.msra.mxu0 %v5090_v6  ;;  %3249 = vmatprep.mubr.msk.f32.mxu0 %vm3548_vm0, %v5089_v61 }
 0x1b5   :  { %3243 = vmatprep.subr.mxu0 %v5089_v61 }
 0x1b6   :  { %3244 = vmatpush3.msra.mxu0 %v5091_v31 }
 0x1b7   :  { %3245 = vmatprep.subr.mxu0 %v5089_v61 }
 0x1b8   :  { %3246 = vmatpush3.msra.mxu0 %v5092_v37 }
 0x1b9   :  { %3247 = vmatprep.subr.mxu0 %v5089_v61  ;;  %v1193_v61 = vrot.slane %v1179_v33, %v3840_v41  ;;  %v5105_v33 = vld [vmem:[#allocation23_spill] sm:$0xff] }
 0x1ba   :  { %3248 = vmatpush3.msra.mxu0 %v5093_v34 }
 0x1bb   :  { %2962 = vmatprep.subr.bf16.mxu0 %v5094_v60 }
 0x1f3   :  { %v4207_v40 = vpop.f32.mrf.mxu0 }
 0x1f4   :  { %5095 = vst [vmem:[#allocation24_spill] sm:$0xff] %v4207_v40  ;;  %v1195_v40 = vcombine.high %v1193_v61, %v1193_v61 }
 0x1f5   :  { %v3229_v6 = vpop.f32.mrf.mxu0 }
 0x213   :  { %v2792_v8 = vpop.f32.mrf.mxu0 }
 0x215   :  { %v2793_v44 = vpop.f32.mrf.mxu0 }
 0x216   :  { %v2794_v35 = vadd.f32 %v2793_v44, %v2792_v8  ;;  %v5110_v44 = vld [vmem:[#allocation33_spill] sm:$0xff] }
 0x217   :  { %v2795_v1 = vpop.f32.mrf.mxu0 }
 0x218   :  { %v1016_v31 = vadd.f32 %v2794_v35, %v976_v63  ;;  %v5108_v1 = vld [vmem:[#allocation29_spill] sm:$0xff]  ;;  %v5109_v35 = vld [vmem:[#allocation31_spill] sm:$0xff]  ;;  %v5112_v63 = vld [vmem:[#allocation36_spill] sm:$0xff] }
 0x219   :  { %v2796_v62 = vpop.f32.mrf.mxu0 }
 0x21a   :  { %v1056_v28 = vadd.f32 %v2816_v29, %v1016_v31  ;;  %v5103_v29 = vld [vmem:[#allocation21_spill] sm:$0xff]  ;;  %v5107_v62 = vld [vmem:[#allocation27_spill] sm:$0xff] }
 0x233   :  { %v2836_v37 = vpop.f32.mrf.mxu0 }
 0x235   :  { %v2837_v4 = vpop.f32.mrf.mxu0 }
 0x236   :  { %v2838_v34 = vadd.f32 %v2837_v4, %v2836_v37  ;;  %v5102_v4 = vld [vmem:[#allocation20_spill] sm:$0xff]  ;;  %v5114_v37 = vmov 0.0  }
 0x237   :  { %v2839_v2 = vpop.f32.mrf.mxu0 }
 0x238   :  { %v1096_v60 = vadd.f32 %v2838_v34, %v1056_v28  ;;  %v5101_v2 = vld [vmem:[#allocation19_spill] sm:$0xff]  ;;  %v5106_v28 = vld [vmem:[#allocation25_spill] sm:$0xff] }
 0x239   :  { %v2840_v0 = vpop.f32.mrf.mxu0  ;;  %v5111_v34 = vld [vmem:[#allocation35_spill] sm:$0xff] }
 0x23a   :  { %v1101_v6 = vmax.f32 %v1096_v60, 0.0  ;;  %v5116_v60 = vld [vmem:[#allocation39_spill] sm:$0xff] }
 0x23c   :  { %3239 = vmatmul.mubr.msk.f32.vlgmr.msra.gmra.mxu1 %vm821_vm1, %v1101_v6  ;;  %v5117_v6 = vld [vmem:[#allocation40_spill] sm:$0xff] }
 0x23d   :  { %2870 = vmatpush3.bf16.msra.mxu1 %v3649_v3  ;;  %1293 = vmatprep.mubr.bf16.mxu1 %v1195_v40  ;;  %v1196_v3 = vcombine.high %v1176_v39, %v1176_v39  ;;  %v5113_v39 = vld [vmem:[#allocation37_spill] sm:$0xff]  ;;  %v5115_v40 = vld [vmem:[#allocation38_spill] sm:$0xff] }
 0x23e   :  { %2871 = vmatprep.subr.bf16.mxu1 %v3661_v5 }
 0x23f   :  { %v1210_v5 = vrot.slane %v1196_v3, %v3840_v41  ;;  %v5118_v3 = vld [vmem:[#allocation41_spill] sm:$0xff] }
 0x241   :  { %2872 = vmatpush3.bf16.msra.mxu1 %v3673_v7  ;;  %v1212_v7 = vcombine.high %v1210_v5, %v1210_v5 }
 0x242   :  { %2873 = vmatprep.subr.bf16.mxu1 %v3685_v9  ;;  %v4247_v9 = vld [vmem:[%s4965_s9 + $0x78] sm:$0xff]  }
 0x245   :  { %2874 = vmatpush3.bf16.msra.mxu1 %v3697_v11  ;;  %v4253_v11 = vld [vmem:[%s4965_s9 + $0x38] sm:$0xff]  }
 0x246   :  { %2875 = vmatprep.subr.bf16.mxu1 %v3709_v13  ;;  %v4259_v13 = vld [vmem:[%s4965_s9 + $0x70] sm:$0xff]  }
 0x249   :  { %2876 = vmatpush3.bf16.msra.mxu1 %v3721_v15 }
 0x24a   :  { %2877 = vmatprep.subr.bf16.mxu1 %v3733_v17  ;;  %v4265_v17 = vld [vmem:[%s4965_s9 + $0x30] sm:$0xff]  }
 0x24d   :  { %2878 = vmatpush3.bf16.msra.mxu1 %v3745_v19 }
 0x24e   :  { %2879 = vmatprep.subr.bf16.mxu1 %v3757_v21  ;;  %v4271_v21 = vld [vmem:[%s4965_s9 + $0x68] sm:$0xff]  }
 0x251   :  { %2880 = vmatpush3.bf16.msra.mxu1 %v3769_v23 }
 0x252   :  { %2881 = vmatprep.subr.bf16.mxu1 %v3781_v25 }
 0x253   :  { %v2863_v15 = vpop.f32.mrf.mxu0 }
 0x255   :  { %2882 = vmatpush3.bf16.msra.mxu1 %v3793_v27  ;;  %v2864_v19 = vpop.f32.mrf.mxu0 }
 0x256   :  { %2883 = vmatprep.subr.bf16.mxu1 %v3805_v30  ;;  %v4274_v23 = vadd.f32 %v2864_v19, %v2863_v15  ;;  %v5096_v30 = vld [vmem:[#allocation13_spill] sm:$0xff] }
 0x257   :  { %v2866_v25 = vpop.f32.mrf.mxu0 }
 0x259   :  { %2884 = vmatpush3.bf16.msra.mxu1 %v3817_v32  ;;  %v2867_v27 = vpop.f32.mrf.mxu0  ;;  %v5098_v32 = vld [vmem:[#allocation16_spill] sm:$0xff] }
 0x25a   :  { %2913 = vmatprep.subr.bf16.mxu1 %v3836_v38 }
 0x25c   :  { %1294 = vmatmul.mubr.bf16.vlgmr.msra.gmra.mxu1 %v1193_v61  ;;  %v4308_v61 = vld [vmem:[%s4962_s6 + $0x8] sm:$0xff] }
 0x25d   :  { %2914 = vmatpush3.bf16.msra.mxu1 %v3852_v45  ;;  %1373 = vmatprep.mubr.bf16.mxu1 %v1212_v7  ;;  %v1483_v8 = vrot.slane %v4308_v61, %v3840_v41  ;;  %v4333_v7 = vld [vmem:[%s4968_s12] ss:$0 sm:$0xff] }
 0x25e   :  { %2915 = vmatprep.subr.bf16.mxu1 %v3862_v49 }
 0x25f   :  { %v1491_v31 = vcombine.high %v1483_v8, %v1483_v8 }
 0x261   :  { %2916 = vmatpush3.bf16.msra.mxu1 %v3872_v51 }
 0x262   :  { %2917 = vmatprep.subr.bf16.mxu1 %v3886_v53 }
 0x265   :  { %2918 = vmatpush3.bf16.msra.mxu1 %v3896_v55 }
 0x266   :  { %2919 = vmatprep.subr.bf16.mxu1 %v3910_v57 }
 0x269   :  { %2920 = vmatpush3.bf16.msra.mxu1 %v5065_v48 }
 0x26a   :  { %2921 = vmatprep.subr.bf16.mxu1 %v5066_v50 }
 0x26d   :  { %2922 = vmatpush3.bf16.msra.mxu1 %v5067_v52 }
 0x26e   :  { %2923 = vmatprep.subr.bf16.mxu1 %v5068_v54 }
 0x271   :  { %2924 = vmatpush3.bf16.msra.mxu1 %v5069_v56 }
 0x272   :  { %2925 = vmatprep.subr.bf16.mxu1 %v5070_v58 }
 0x275   :  { %2926 = vmatpush3.bf16.msra.mxu1 %v3997_v47 }
 0x276   :  { %2927 = vmatprep.subr.bf16.mxu1 %v4010_v36 }
 0x279   :  { %2928 = vmatpush3.bf16.msra.mxu1 %v4023_v42 }
 0x27a   :  { %2940 = vmatprep.subr.bf16.mxu1 %v4247_v9 }
 0x27c   :  { %1374 = vmatmul.mubr.bf16.vlgmr.msra.gmra.mxu1 %v1210_v5  ;;  %v4327_v5 = vld [vmem:[%s4965_s9 + $0xf8] sm:$0xff]  }
 0x27d   :  { %2941 = vmatpush3.bf16.msra.mxu1 %v4253_v11 }
 0x27e   :  { %2942 = vmatprep.subr.bf16.mxu1 %v4259_v13 }
 0x281   :  { %2943 = vmatpush3.bf16.msra.mxu1 %v4265_v17 }
 0x282   :  { %2944 = vmatprep.subr.bf16.mxu1 %v4271_v21 }
 0x285   :  { %2945 = vmatpush3.bf16.msra.mxu1 %v3691_v10  ;;  %v5097_v10 = vld [vmem:[#allocation14_spill] sm:$0xff] }
 0x286   :  { %2946 = vmatprep.subr.bf16.mxu1 %v3703_v12  ;;  %v2907_v12 = vpop.f32.mrf.mxu0 }
 0x289   :  { %2947 = vmatpush3.bf16.msra.mxu1 %v3715_v14  ;;  %v2908_v14 = vpop.f32.mrf.mxu0 }
 0x28a   :  { %2948 = vmatprep.subr.bf16.mxu1 %v3727_v16  ;;  %v2909_v43 = vadd.f32 %v2908_v14, %v2907_v12 }
 0x28b   :  { %v2910_v16 = vpop.f32.mrf.mxu0 }
 0x28d   :  { %2949 = vmatpush3.bf16.msra.mxu1 %v3739_v18  ;;  %v2911_v0 = vpop.f32.mrf.mxu0  ;;  %v1455_v18 = vld [vmem:[%s4962_s6] sm:$0xff]  ;;  %s3517_s6 = scalar_lea.vmem %s2553_s20, 16 }
 0x28e   :  { %2950 = vmatprep.subr.bf16.mxu1 %v3751_v20  ;;  %v1466_v20 = vrot.slane %v1455_v18, %v3840_v41  ;;  %p3518_p1 = scmp.ne.s32.totalorder %s2553_s20, %s3517_s6  ;;  %p3523_p3 = scmp.lt.s32.totalorder %s3521_s21, %s3517_s6 }
 0x290   :  { %p3524_p4 = por %p3523_p3, %p3522_p2 }
 0x291   :  { %2951 = vmatpush3.bf16.msra.mxu1 %v3763_v22  ;;  %v1474_v22 = vcombine.high %v1466_v20, %v1466_v20 }
 0x292   :  { %2952 = vmatprep.subr.bf16.mxu1 %v3775_v24  ;;  %v5099_v24 = vld [vmem:[#allocation17_spill] sm:$0xff]  ;;  %p3525_p5 = pnand %p3524_p4, %p3518_p1 }
 0x293   :  { %1533 = vmatprep.mubr.bf16.mxu1 %v1474_v22  ;;  %v1459_v22 = vcombine.high %v1455_v18, %v1455_v18  ;;  %v4359_v18 = vld [vmem:[%s4965_s9 + $0xb0] sm:$0xff]  }
 0x295   :  { %2953 = vmatpush3.bf16.msra.mxu1 %v3787_v26  ;;  %v5100_v26 = vld [vmem:[#allocation18_spill] sm:$0xff] }
 0x296   :  { %2954 = vmatprep.subr.bf16.mxu1 %v5096_v30 }
 0x299   :  { %2955 = vmatpush3.bf16.msra.mxu1 %v5097_v10  ;;  %v1256_v10 = vadd.f32 %v4274_v23, %v4117_v59  ;;  %v4347_v23 = vld [vmem:[%s4965_s9 + $0xb8] sm:$0xff]  }
 0x29a   :  { %2984 = vmatprep.subr.bf16.mxu1 %v5098_v32 }
 0x29c   :  { %1534 = vmatmul.mubr.bf16.vlgmr.msra.gmra.mxu1 %v1466_v20 }
 0x29d   :  { %2985 = vmatpush3.bf16.msra.mxu1 %v5099_v24  ;;  %1613 = vmatprep.mubr.bf16.mxu1 %v1491_v31 }
 0x29e   :  { %2986 = vmatprep.subr.bf16.mxu1 %v5100_v26 }
 0x2a1   :  { %2987 = vmatpush3.bf16.msra.mxu1 %v5101_v2  ;;  %v1473_v2 = vrot.slane %v1459_v22, %v3840_v41  ;;  %v4415_v22 = vld [vmem:[%s4965_s9 + $0xc8] sm:$0xff]  }
 0x2a2   :  { %2988 = vmatprep.subr.bf16.mxu1 %v5102_v4 }
 0x2a5   :  { %2989 = vmatpush3.bf16.msra.mxu1 %v5103_v29 }
 0x2a6   :  { %2990 = vmatprep.subr.bf16.mxu1 %v5104_v46 }
 0x2a9   :  { %2991 = vmatpush3.bf16.msra.mxu1 %v5105_v33 }
 0x2aa   :  { %2992 = vmatprep.subr.bf16.mxu1 %v5106_v28 }
 0x2ad   :  { %2993 = vmatpush3.bf16.msra.mxu1 %v5107_v62 }
 0x2ae   :  { %2994 = vmatprep.subr.bf16.mxu1 %v5108_v1 }
 0x2b1   :  { %2995 = vmatpush3.bf16.msra.mxu1 %v5109_v35 }
 0x2b2   :  { %2996 = vmatprep.subr.bf16.mxu1 %v5110_v44 }
 0x2b5   :  { %2997 = vmatpush3.bf16.msra.mxu1 %v5111_v34 }
 0x2b6   :  { %2998 = vmatprep.subr.bf16.mxu1 %v5112_v63 }
 0x2b9   :  { %2999 = vmatpush3.bf16.msra.mxu1 %v5113_v39 }
 0x2ba   :  { %3252 = vmatprep.subr.mxu1 %v5114_v37 }
 0x2bc   :  { %1614 = vmatmul.mubr.bf16.vlgmr.msra.gmra.mxu1 %v1483_v8 }
 0x2bd   :  { %3253 = vmatpush3.msra.mxu1 %v5115_v40  ;;  %3260 = vmatprep.mubr.msk.f32.mxu1 %vm3548_vm0, %v5114_v37 }
 0x2be   :  { %3254 = vmatprep.subr.mxu1 %v5114_v37 }
 0x2bf   :  { %3255 = vmatpush3.msra.mxu1 %v5116_v60 }
 0x2c0   :  { %3256 = vmatprep.subr.mxu1 %v5114_v37 }
 0x2c1   :  { %3257 = vmatpush3.msra.mxu1 %v5117_v6 }
 0x2c2   :  { %3258 = vmatprep.subr.mxu1 %v5114_v37 }
 0x2c3   :  { %3259 = vmatpush3.msra.mxu1 %v5118_v3 }
 0x2c4   :  { %3055 = vmatprep.subr.bf16.mxu1 %v4327_v5 }
 0x2fc   :  { %v1171_v15 = vpop.f32.mrf.mxu1 }
 0x2fd   :  { %v4336_v19 = vadd.f32 %v4333_v7, %v1171_v15  ;;  %v1475_v15 = vcombine.high %v1473_v2, %v1473_v2 }
 0x2fe   :  { %v3240_v25 = vpop.f32.mrf.mxu1 }
 0x2ff   :  { %v2350_v27 = vsel %vm2305_vm2, %v4336_v19, -inf }
 0x300   :  { %2351 = vmax.xlane.f32.xlu1 %v2350_v27  ;;  %v4365_v27 = vld [vmem:[%s4965_s9 + $0xe8] sm:$0xff]  }
 0x31c   :  { %v2885_v30 = vpop.f32.mrf.mxu1 }
 0x31e   :  { %v2886_v32 = vpop.f32.mrf.mxu1 }
 0x31f   :  { %v2887_v12 = vadd.f32 %v2886_v32, %v2885_v30  ;;  %v4371_v30 = vld [vmem:[%s4965_s9 + $0xa8] sm:$0xff]   ;;  %v4383_v32 = vld [vmem:[%s4965_s9 + $0xa0] sm:$0xff]  }
 0x320   :  { %v2888_v14 = vpop.f32.mrf.mxu1 }
 0x321   :  { %v1296_v16 = vadd.f32 %v2887_v12, %v1256_v10  ;;  %v4377_v10 = vld [vmem:[%s4965_s9 + $0xe0] sm:$0xff]   ;;  %v4389_v12 = vld [vmem:[%s4965_s9 + $0xd8] sm:$0xff]  }
 0x322   :  { %v2889_v0 = vpop.f32.mrf.mxu1  ;;  %v4395_v14 = vld [vmem:[%s4965_s9 + $0x98] sm:$0xff]  }
 0x323   :  { %v1336_v20 = vadd.f32 %v2909_v43, %v1296_v16  ;;  %v4353_v43 = vld [vmem:[%s4965_s9 + $0xf0] sm:$0xff]  }
 0x324   :  { %v4401_v16 = vld [vmem:[%s4965_s9 + $0xd0] sm:$0xff]  }
 0x325   :  { %v4407_v0 = vld [vmem:[%s4965_s9 + $0x90] sm:$0xff]  }
 0x33c   :  { %v2929_v24 = vpop.f32.mrf.mxu1 }
 0x33e   :  { %v2930_v26 = vpop.f32.mrf.mxu1 }
 0x33f   :  { %v2931_v4 = vadd.f32 %v2930_v26, %v2929_v24  ;;  %v4421_v24 = vld [vmem:[%s4965_s9 + $0x88] sm:$0xff]  }
 0x340   :  { %v2932_v29 = vpop.f32.mrf.mxu1 }
 0x341   :  { %v1376_v8 = vadd.f32 %v2931_v4, %v1336_v20  ;;  %v1476_v20 = vcombine.high %v4308_v61, %v4308_v61  ;;  %v4428_v61 = vld [vmem:[%s4965_s9 + $0xc0] sm:$0xff]  }
 0x342   :  { %v2933_v31 = vpop.f32.mrf.mxu1  ;;  %v4434_v4 = vld [vmem:[%s4965_s9 + $0x80] sm:$0xff]  }
 0x343   :  { %v1381_v25 = vmax.f32 %v1376_v8, 0.0  ;;  %v1490_v26 = vrot.slane %v1476_v20, %v3840_v41  ;;  %v1735_v20 = vld [vmem:[%s4963_s7] sm:$0xff] }
 0x345   :  { %3250 = vmatmul.mubr.msk.f32.vlgmr.msra.gmra.mxu0 %vm821_vm1, %v1381_v25  ;;  %v1492_v29 = vcombine.high %v1490_v26, %v1490_v26 }
 0x346   :  { %2963 = vmatpush3.bf16.msra.mxu0 %v4347_v23  ;;  %1573 = vmatprep.mubr.bf16.mxu0 %v1475_v15 }
 0x347   :  { %2964 = vmatprep.subr.bf16.mxu0 %v4353_v43 }
 0x34a   :  { %2965 = vmatpush3.bf16.msra.mxu0 %v4359_v18 }
 0x34b   :  { %2966 = vmatprep.subr.bf16.mxu0 %v4365_v27 }
 0x34e   :  { %2967 = vmatpush3.bf16.msra.mxu0 %v4371_v30 }
 0x34f   :  { %2968 = vmatprep.subr.bf16.mxu0 %v4377_v10 }
 0x352   :  { %2969 = vmatpush3.bf16.msra.mxu0 %v4383_v32 }
 0x353   :  { %2970 = vmatprep.subr.bf16.mxu0 %v4389_v12 }
 0x356   :  { %2971 = vmatpush3.bf16.msra.mxu0 %v4395_v14 }
 0x357   :  { %2972 = vmatprep.subr.bf16.mxu0 %v4401_v16 }
 0x35a   :  { %2973 = vmatpush3.bf16.msra.mxu0 %v4407_v0 }
 0x35b   :  { %2974 = vmatprep.subr.bf16.mxu0 %v4415_v22 }
 0x35e   :  { %2975 = vmatpush3.bf16.msra.mxu0 %v4421_v24 }
 0x35f   :  { %2976 = vmatprep.subr.bf16.mxu0 %v4428_v61 }
 0x362   :  { %2977 = vmatpush3.bf16.msra.mxu0 %v4434_v4 }
 0x363   :  { %3006 = vmatprep.subr.bf16.mxu0 %v3836_v38  ;;  %v2956_v38 = vpop.f32.mrf.mxu1 }
 0x365   :  { %1574 = vmatmul.mubr.bf16.vlgmr.msra.gmra.mxu0 %v1473_v2  ;;  %v2957_v41 = vpop.f32.mrf.mxu1 }
 0x366   :  { %3007 = vmatpush3.bf16.msra.mxu0 %v3852_v45  ;;  %1653 = vmatprep.mubr.bf16.mxu0 %v1492_v29  ;;  %v4457_v45 = vadd.f32 %v2957_v41, %v2956_v38  ;;  %v2633_v29 = vcombine.low %v1735_v20, %v1735_v20  ;;  %v4538_v38 = vld [vmem:[%s4965_s9 + $0x138] sm:$0xff]   ;;  %v4544_v41 = vld [vmem:[%s4965_s9 + $0x170] sm:$0xff]  }
 0x367   :  { %3008 = vmatprep.subr.bf16.mxu0 %v3862_v49  ;;  %v2959_v49 = vpop.f32.mrf.mxu1 }
 0x368   :  { %v4550_v49 = vld [vmem:[%s4965_s9 + $0x130] sm:$0xff]  }
 0x36a   :  { %3009 = vmatpush3.bf16.msra.mxu0 %v3872_v51  ;;  %v2960_v51 = vpop.f32.mrf.mxu1 }
 0x36b   :  { %3010 = vmatprep.subr.bf16.mxu0 %v3886_v53  ;;  %v4463_v53 = vld [vmem:[%s4965_s9 + $0x28] sm:$0xff]  }
 0x36c   :  { %v4556_v51 = vld [vmem:[%s4965_s9 + $0x168] sm:$0xff]  }
 0x36e   :  { %3011 = vmatpush3.bf16.msra.mxu0 %v3896_v55  ;;  %v4469_v55 = vld [vmem:[%s4965_s9 + $0x60] sm:$0xff]  }
 0x36f   :  { %3012 = vmatprep.subr.bf16.mxu0 %v3910_v57  ;;  %v4475_v57 = vld [vmem:[%s4965_s9 + $0x20] sm:$0xff]  }
 0x372   :  { %3013 = vmatpush3.bf16.msra.mxu0 %v5065_v48  ;;  %v4499_v48 = vld [vmem:[%s4965_s9 + $0x10] sm:$0xff]  }
 0x373   :  { %3014 = vmatprep.subr.bf16.mxu0 %v5066_v50  ;;  %v4505_v50 = vld [vmem:[%s4965_s9 + $0x48] sm:$0xff]  }
 0x376   :  { %3015 = vmatpush3.bf16.msra.mxu0 %v5067_v52  ;;  %v4511_v52 = vld [vmem:[%s4965_s9 + $0x8] sm:$0xff]  }
 0x377   :  { %3016 = vmatprep.subr.bf16.mxu0 %v5068_v54  ;;  %v4517_v54 = vld [vmem:[%s4965_s9 + $0x40] sm:$0xff]  }
 0x37a   :  { %3017 = vmatpush3.bf16.msra.mxu0 %v5069_v56  ;;  %v4523_v56 = vld [vmem:[%s4965_s9] sm:$0xff]  }
 0x37b   :  { %3018 = vmatprep.subr.bf16.mxu0 %v5070_v58  ;;  %v4529_v58 = vld [vmem:[%s4965_s9 + $0x178] sm:$0xff]  }
 0x37c   :  { %v3000_v2 = vpop.f32.mrf.mxu1 }
 0x37e   :  { %3019 = vmatpush3.bf16.msra.mxu0 %v3997_v47  ;;  %v4493_v47 = vld [vmem:[%s4965_s9 + $0x50] sm:$0xff]   ;;  %v3001_v8 = vpop.f32.mrf.mxu1 }
 0x37f   :  { %3020 = vmatprep.subr.bf16.mxu0 %v4010_v36  ;;  %v4481_v36 = vld [vmem:[%s4965_s9 + $0x58] sm:$0xff]   ;;  %v3002_v31 = vadd.f32 %v3001_v8, %v3000_v2  ;;  %v4562_v2 = vld [vmem:[%s4965_s9 + $0x128] sm:$0xff]  }
 0x380   :  { %v3003_v15 = vpop.f32.mrf.mxu1 }
 0x382   :  { %3021 = vmatpush3.bf16.msra.mxu0 %v4023_v42  ;;  %v4487_v42 = vld [vmem:[%s4965_s9 + $0x18] sm:$0xff]   ;;  %v3004_v25 = vpop.f32.mrf.mxu1 }
 0x383   :  { %3033 = vmatprep.subr.bf16.mxu0 %v4247_v9 }
 0x385   :  { %1654 = vmatmul.mubr.bf16.vlgmr.msra.gmra.mxu0 %v1490_v26  ;;  %v2634_v26 = vcombine.high %v1735_v20, %v1735_v20 }
 0x386   :  { %3034 = vmatpush3.bf16.msra.mxu0 %v4253_v11 }
 0x387   :  { %3035 = vmatprep.subr.bf16.mxu0 %v4259_v13  ;;  %1799 = vmatprep.mubr.bf16.mxu0 %v2634_v26 }
 0x38a   :  { %3036 = vmatpush3.bf16.msra.mxu0 %v4265_v17 }
 0x38b   :  { %3037 = vmatprep.subr.bf16.mxu0 %v4271_v21 }
 0x38e   :  { %3038 = vmatpush3.bf16.msra.mxu0 %v4463_v53 }
 0x38f   :  { %3039 = vmatprep.subr.bf16.mxu0 %v4469_v55 }
 0x392   :  { %3040 = vmatpush3.bf16.msra.mxu0 %v4475_v57 }
 0x393   :  { %3041 = vmatprep.subr.bf16.mxu0 %v4481_v36 }
 0x396   :  { %3042 = vmatpush3.bf16.msra.mxu0 %v4487_v42 }
 0x397   :  { %3043 = vmatprep.subr.bf16.mxu0 %v4493_v47 }
 0x39a   :  { %3044 = vmatpush3.bf16.msra.mxu0 %v4499_v48 }
 0x39b   :  { %3045 = vmatprep.subr.bf16.mxu0 %v4505_v50 }
 0x39e   :  { %3046 = vmatpush3.bf16.msra.mxu0 %v4511_v52 }
 0x39f   :  { %3047 = vmatprep.subr.bf16.mxu0 %v4517_v54 }
 0x3a2   :  { %3048 = vmatpush3.bf16.msra.mxu0 %v4523_v56 }
 0x3a3   :  { %3077 = vmatprep.subr.bf16.mxu0 %v4529_v58 }
 0x3a5   :  { %1800 = vmatmul.mubr.bf16.vlgmr.msra.gmra.mxu0 %v2633_v29 }
 0x3a6   :  { %3078 = vmatpush3.bf16.msra.mxu0 %v4538_v38 }
 0x3a7   :  { %3079 = vmatprep.subr.bf16.mxu0 %v4544_v41 }
 0x3aa   :  { %3080 = vmatpush3.bf16.msra.mxu0 %v4550_v49 }
 0x3ab   :  { %3081 = vmatprep.subr.bf16.mxu0 %v4556_v51 }
 0x3ae   :  { %3082 = vmatpush3.bf16.msra.mxu0 %v4562_v2 }
 0x3af   :  { %3083 = vmatprep.subr.bf16.mxu0 %v5104_v46  ;;  %v1737_v46 = vld [vmem:[%s4963_s7 + $0x10] sm:$0xff] }
 0x3b0   :  { %v2638_v8 = vcombine.high %v1737_v46, %v1737_v46 }
 0x3b2   :  { %3084 = vmatpush3.bf16.msra.mxu0 %v5105_v33  ;;  %v2637_v33 = vcombine.low %v1737_v46, %v1737_v46  ;;  %1879 = vmatprep.mubr.bf16.mxu0 %v2638_v8 }
 0x3b3   :  { %3085 = vmatprep.subr.bf16.mxu0 %v5106_v28 }
 0x3b6   :  { %3086 = vmatpush3.bf16.msra.mxu0 %v5107_v62 }
 0x3b7   :  { %3087 = vmatprep.subr.bf16.mxu0 %v5108_v1 }
 0x3ba   :  { %3088 = vmatpush3.bf16.msra.mxu0 %v5109_v35  ;;  %v1536_v35 = vadd.f32 %v4457_v45, %v4117_v59  ;;  %v1738_v45 = vld [vmem:[%s4963_s7 + $0x18] sm:$0xff] }
 0x3bb   :  { %3089 = vmatprep.subr.bf16.mxu0 %v5110_v44  ;;  %v2640_v8 = vcombine.high %v1738_v45, %v1738_v45 }
 0x3be   :  { %3090 = vmatpush3.bf16.msra.mxu0 %v5111_v34 }
 0x3bf   :  { %3091 = vmatprep.subr.bf16.mxu0 %v5112_v63 }
 0x3c2   :  { %3092 = vmatpush3.bf16.msra.mxu0 %v5113_v39 }
 0x3c3   :  { %3263 = vmatprep.subr.mxu0 %v5114_v37 }
 0x3c5   :  { %1880 = vmatmul.mubr.bf16.vlgmr.msra.gmra.mxu0 %v2637_v33  ;;  %v4618_v33 = vld [vmem:[%s4965_s9 + $0x1f8] sm:$0xff]  }
 0x3c6   :  { %3264 = vmatpush3.msra.mxu0 %v5115_v40  ;;  %3271 = vmatprep.mubr.msk.f32.mxu0 %vm3548_vm0, %v5114_v37 }
 0x3c7   :  { %3265 = vmatprep.subr.mxu0 %v5114_v37 }
 0x3c8   :  { %3266 = vmatpush3.msra.mxu0 %v5116_v60 }
 0x3c9   :  { %3267 = vmatprep.subr.mxu0 %v5114_v37 }
 0x3ca   :  { %3268 = vmatpush3.msra.mxu0 %v5117_v6 }
 0x3cb   :  { %3269 = vmatprep.subr.mxu0 %v5114_v37 }
 0x3cc   :  { %3270 = vmatpush3.msra.mxu0 %v5118_v3  ;;  %v1736_v3 = vld [vmem:[%s4963_s7 + $0x8] sm:$0xff] }
 0x3cd   :  { %3148 = vmatprep.subr.bf16.mxu0 %v4327_v5  ;;  %v2636_v29 = vcombine.high %v1736_v3, %v1736_v3 }
 0x405   :  { %v4589_v28 = vpop.f32.mrf.mxu0 }
 0x407   :  { %v3251_v62 = vpop.f32.mrf.mxu0 }
 0x408   :  { %v4624_v62 = vld [vmem:[%s4965_s9 + $0x1b8] sm:$0xff]  }
 0x425   :  { %v2978_v1 = vpop.f32.mrf.mxu0 }
 0x427   :  { %v2979_v44 = vpop.f32.mrf.mxu0 }
 0x428   :  { %v2980_v34 = vadd.f32 %v2979_v44, %v2978_v1  ;;  %v4630_v1 = vld [vmem:[%s4965_s9 + $0x1f0] sm:$0xff]   ;;  %v4642_v44 = vld [vmem:[%s4965_s9 + $0x1e8] sm:$0xff]  }
 0x429   :  { %v2981_v63 = vpop.f32.mrf.mxu0 }
 0x42a   :  { %v1576_v39 = vadd.f32 %v2980_v34, %v1536_v35  ;;  %v4636_v35 = vld [vmem:[%s4965_s9 + $0x1b0] sm:$0xff]   ;;  %v4648_v34 = vld [vmem:[%s4965_s9 + $0x1a8] sm:$0xff]   ;;  %v4654_v63 = vld [vmem:[%s4965_s9 + $0x1e0] sm:$0xff]  }
 0x42b   :  { %v2982_v40 = vpop.f32.mrf.mxu0 }
 0x42c   :  { %v1616_v60 = vadd.f32 %v3002_v31, %v1576_v39  ;;  %v2635_v31 = vcombine.low %v1736_v3, %v1736_v3  ;;  %v4660_v39 = vld [vmem:[%s4965_s9 + $0x1a0] sm:$0xff]   ;;  %v4666_v40 = vld [vmem:[%s4965_s9 + $0x1d8] sm:$0xff]   ;;  %v4696_v3 = vld [vmem:[%s4965_s9 + $0x188] sm:$0xff]  }
 0x445   :  { %v3022_v6 = vpop.f32.mrf.mxu0 }
 0x447   :  { %v3023_v15 = vpop.f32.mrf.mxu0 }
 0x448   :  { %v3024_v25 = vadd.f32 %v3023_v15, %v3022_v6  ;;  %v4678_v6 = vld [vmem:[%s4965_s9 + $0x1d0] sm:$0xff]  }
 0x449   :  { %v3025_v5 = vpop.f32.mrf.mxu0  ;;  %v4684_v15 = vld [vmem:[%s4965_s9 + $0x190] sm:$0xff]  }
 0x44a   :  { %v1656_v20 = vadd.f32 %v3024_v25, %v1616_v60  ;;  %v4672_v60 = vld [vmem:[%s4965_s9 + $0x198] sm:$0xff]   ;;  %v4690_v25 = vld [vmem:[%s4965_s9 + $0x1c8] sm:$0xff]   ;;  %v4702_v5 = vld [vmem:[%s4965_s9 + $0x1c0] sm:$0xff]  }
 0x44b   :  { %v3026_v26 = vpop.f32.mrf.mxu0 }
 0x44c   :  { %v1661_v46 = vmax.f32 %v1656_v20, 0.0  ;;  %v2639_v20 = vcombine.low %v1738_v45, %v1738_v45  ;;  %v4708_v26 = vld [vmem:[%s4965_s9 + $0x180] sm:$0xff]  }
 0x44e   :  { %3261 = vmatmul.mubr.msk.f32.vlgmr.msra.gmra.mxu1 %vm821_vm1, %v1661_v46 }
 0x44f   :  { %3056 = vmatpush3.bf16.msra.mxu1 %v4347_v23  ;;  %1839 = vmatprep.mubr.bf16.mxu1 %v2636_v29 }
 0x450   :  { %3057 = vmatprep.subr.bf16.mxu1 %v4353_v43 }
 0x453   :  { %3058 = vmatpush3.bf16.msra.mxu1 %v4359_v18 }
 0x454   :  { %3059 = vmatprep.subr.bf16.mxu1 %v4365_v27 }
 0x457   :  { %3060 = vmatpush3.bf16.msra.mxu1 %v4371_v30 }
 0x458   :  { %3061 = vmatprep.subr.bf16.mxu1 %v4377_v10 }
 0x45b   :  { %3062 = vmatpush3.bf16.msra.mxu1 %v4383_v32 }
 0x45c   :  { %3063 = vmatprep.subr.bf16.mxu1 %v4389_v12 }
 0x45f   :  { %3064 = vmatpush3.bf16.msra.mxu1 %v4395_v14 }
 0x460   :  { %3065 = vmatprep.subr.bf16.mxu1 %v4401_v16 }
 0x463   :  { %3066 = vmatpush3.bf16.msra.mxu1 %v4407_v0 }
 0x464   :  { %3067 = vmatprep.subr.bf16.mxu1 %v4415_v22 }
 0x465   :  { %v3049_v29 = vpop.f32.mrf.mxu0 }
 0x467   :  { %3068 = vmatpush3.bf16.msra.mxu1 %v4421_v24  ;;  %v3050_v46 = vpop.f32.mrf.mxu0 }
 0x468   :  { %3069 = vmatprep.subr.bf16.mxu1 %v4428_v61 }
 0x469   :  { %v3052_v45 = vpop.f32.mrf.mxu0 }
 0x46b   :  { %3070 = vmatpush3.bf16.msra.mxu1 %v4434_v4 }
 0x46c   :  { %3099 = vmatprep.subr.bf16.mxu1 %v4618_v33 }
 0x46e   :  { %1840 = vmatmul.mubr.bf16.vlgmr.msra.gmra.mxu1 %v2635_v31  ;;  %v3051_v31 = vadd.f32 %v3050_v46, %v3049_v29 }
 0x46f   :  { %3100 = vmatpush3.bf16.msra.mxu1 %v4624_v62  ;;  %1919 = vmatprep.mubr.bf16.mxu1 %v2640_v8  ;;  %v3053_v8 = vpop.f32.mrf.mxu0 }
 0x470   :  { %3101 = vmatprep.subr.bf16.mxu1 %v4630_v1 }
 0x473   :  { %3102 = vmatpush3.bf16.msra.mxu1 %v4636_v35 }
 0x474   :  { %3103 = vmatprep.subr.bf16.mxu1 %v4642_v44 }
 0x477   :  { %3104 = vmatpush3.bf16.msra.mxu1 %v4648_v34 }
 0x478   :  { %3105 = vmatprep.subr.bf16.mxu1 %v4654_v63 }
 0x47b   :  { %3106 = vmatpush3.bf16.msra.mxu1 %v4660_v39 }
 0x47c   :  { %3107 = vmatprep.subr.bf16.mxu1 %v4666_v40 }
 0x47f   :  { %3108 = vmatpush3.bf16.msra.mxu1 %v4672_v60 }
 0x480   :  { %3109 = vmatprep.subr.bf16.mxu1 %v4678_v6 }
 0x483   :  { %3110 = vmatpush3.bf16.msra.mxu1 %v4684_v15 }
 0x484   :  { %3111 = vmatprep.subr.bf16.mxu1 %v4690_v25 }
 0x487   :  { %3112 = vmatpush3.bf16.msra.mxu1 %v4696_v3 }
 0x488   :  { %3113 = vmatprep.subr.bf16.mxu1 %v4702_v5 }
 0x48b   :  { %3114 = vmatpush3.bf16.msra.mxu1 %v4708_v26 }
 0x48c   :  { %3126 = vmatprep.subr.bf16.mxu1 %v4247_v9  ;;  %v3093_v9 = vpop.f32.mrf.mxu0 }
 0x48e   :  { %1920 = vmatmul.mubr.bf16.vlgmr.msra.gmra.mxu1 %v2639_v20 }
 0x48f   :  { %3127 = vmatpush3.bf16.msra.mxu1 %v4253_v11  ;;  %v3094_v11 = vpop.f32.mrf.mxu0 }
 0x490   :  { %3128 = vmatprep.subr.bf16.mxu1 %v4259_v13  ;;  %v3095_v13 = vadd.f32 %v3094_v11, %v3093_v9 }
 0x493   :  { %3129 = vmatpush3.bf16.msra.mxu1 %v4265_v17  ;;  %v3096_v17 = vpop.f32.mrf.mxu0 }
 0x494   :  { %3130 = vmatprep.subr.bf16.mxu1 %v4271_v21 }
 0x495   :  { %v3097_v21 = vpop.f32.mrf.mxu0 }
 0x497   :  { %3131 = vmatpush3.bf16.msra.mxu1 %v4463_v53 }
 0x498   :  { %3132 = vmatprep.subr.bf16.mxu1 %v4469_v55 }
 0x49b   :  { %3133 = vmatpush3.bf16.msra.mxu1 %v4475_v57 }
 0x49c   :  { %3134 = vmatprep.subr.bf16.mxu1 %v4481_v36  ;;  %v1802_v36 = vadd.f32 %v3051_v31, %v4117_v59  ;;  %v2001_v59 = vld [vmem:[%s4964_s8] sm:$0xff] }
 0x49f   :  { %3135 = vmatpush3.bf16.msra.mxu1 %v4487_v42 }
 0x4a0   :  { %3136 = vmatprep.subr.bf16.mxu1 %v4493_v47 }
 0x4a3   :  { %3137 = vmatpush3.bf16.msra.mxu1 %v4499_v48 }
 0x4a4   :  { %3138 = vmatprep.subr.bf16.mxu1 %v4505_v50 }
 0x4a7   :  { %3139 = vmatpush3.bf16.msra.mxu1 %v4511_v52 }
 0x4a8   :  { %3140 = vmatprep.subr.bf16.mxu1 %v4517_v54 }
 0x4ab   :  { %3141 = vmatpush3.bf16.msra.mxu1 %v4523_v56 }
 0x4ac   :  { %3170 = vmatprep.subr.bf16.mxu1 %v4529_v58 }
 0x50e   :  { %v4728_v53 = vpop.f32.mrf.mxu1 }
 0x510   :  { %v3262_v55 = vpop.f32.mrf.mxu1 }
 0x52e   :  { %v3071_v57 = vpop.f32.mrf.mxu1 }
 0x530   :  { %v3072_v42 = vpop.f32.mrf.mxu1 }
 0x531   :  { %v3073_v47 = vadd.f32 %v3072_v42, %v3071_v57 }
 0x532   :  { %v3074_v48 = vpop.f32.mrf.mxu1 }
 0x533   :  { %v1842_v50 = vadd.f32 %v3073_v47, %v1802_v36 }
 0x534   :  { %v3075_v52 = vpop.f32.mrf.mxu1 }
 0x535   :  { %v1882_v54 = vadd.f32 %v3095_v13, %v1842_v50 }
 0x54e   :  { %v3115_v56 = vpop.f32.mrf.mxu1 }
 0x550   :  { %v3116_v20 = vpop.f32.mrf.mxu1 }
 0x551   :  { %v3117_v58 = vadd.f32 %v3116_v20, %v3115_v56 }
 0x552   :  { %v3118_v29 = vpop.f32.mrf.mxu1 }
 0x553   :  { %v1922_v46 = vadd.f32 %v3117_v58, %v1882_v54 }
 0x554   :  { %v3119_v45 = vpop.f32.mrf.mxu1 }
 0x555   :  { %v1927_v8 = vmax.f32 %v1922_v46, 0.0 }
 0x557   :  { %3272 = vmatmul.mubr.msk.f32.vlgmr.msra.gmra.mxu0 %vm821_vm1, %v1927_v8  ;;  %v3480_v8 = vld [vmem:[%s4966_s10] ss:$0 sm:$0xff]  ;;  %s2290_s10 = sld [smem:[#allocation7]] }
 0x558   :  { %3149 = vmatpush3.bf16.msra.mxu0 %v4347_v23  ;;  %v2002_v23 = vld [vmem:[%s4964_s8 + $0x8] sm:$0xff] }
 0x559   :  { %3150 = vmatprep.subr.bf16.mxu0 %v4353_v43  ;;  %v2003_v43 = vld [vmem:[%s4964_s8 + $0x10] sm:$0xff] }
 0x55c   :  { %3151 = vmatpush3.bf16.msra.mxu0 %v4359_v18  ;;  %v2642_v18 = vcombine.low %v2001_v59, %v2001_v59 }
 0x55d   :  { %3152 = vmatprep.subr.bf16.mxu0 %v4365_v27  ;;  %v2643_v27 = vcombine.high %v2001_v59, %v2001_v59 }
 0x55f   :  { %2065 = vmatprep.mubr.bf16.mxu1 %v2643_v27 }
 0x560   :  { %3153 = vmatpush3.bf16.msra.mxu0 %v4371_v30  ;;  %v2644_v30 = vcombine.low %v2002_v23, %v2002_v23  ;;  %2066 = vmatmul.mubr.bf16.vlgmr.msra.gmra.mxu1 %v2642_v18 }
 0x561   :  { %3154 = vmatprep.subr.bf16.mxu0 %v4377_v10  ;;  %v2645_v10 = vcombine.high %v2002_v23, %v2002_v23  ;;  %3171 = vmatpush3.bf16.msra.mxu1 %v4538_v38  ;;  %v3472_v38 = vld [vmem:[%s4965_s9 + $0x148] sm:$0xff]  }
 0x562   :  { %3172 = vmatprep.subr.bf16.mxu1 %v4544_v41  ;;  %v3473_v41 = vld [vmem:[%s4965_s9 + $0x108] sm:$0xff]  }
 0x563   :  { %2105 = vmatprep.mubr.bf16.mxu0 %v2645_v10 }
 0x564   :  { %3155 = vmatpush3.bf16.msra.mxu0 %v4383_v32  ;;  %v2004_v32 = vld [vmem:[%s4964_s8 + $0x18] sm:$0xff] }
 0x565   :  { %3156 = vmatprep.subr.bf16.mxu0 %v4389_v12  ;;  %v2647_v12 = vcombine.high %v2003_v43, %v2003_v43  ;;  %3173 = vmatpush3.bf16.msra.mxu1 %v4550_v49  ;;  %v3474_v49 = vld [vmem:[%s4965_s9 + $0x140] sm:$0xff]  }
 0x566   :  { %3174 = vmatprep.subr.bf16.mxu1 %v4556_v51  ;;  %v2646_v51 = vcombine.low %v2003_v43, %v2003_v43 }
 0x567   :  { %2145 = vmatprep.mubr.bf16.mxu1 %v2647_v12 }
 0x568   :  { %3157 = vmatpush3.bf16.msra.mxu0 %v4395_v14  ;;  %v2649_v14 = vcombine.high %v2004_v32, %v2004_v32 }
 0x569   :  { %3158 = vmatprep.subr.bf16.mxu0 %v4401_v16  ;;  %3175 = vmatpush3.bf16.msra.mxu1 %v4562_v2  ;;  %v3466_v16 = vld [vmem:[%s4965_s9 + $0x160] sm:$0xff]   ;;  %v2648_v2 = vcombine.low %v2004_v32, %v2004_v32 }
 0x56a   :  { %3176 = vmatprep.subr.bf16.mxu1 %v3466_v16 }
 0x56c   :  { %3159 = vmatpush3.bf16.msra.mxu0 %v4407_v0  ;;  %v3467_v0 = vld [vmem:[%s4965_s9 + $0x120] sm:$0xff]  }
 0x56d   :  { %3160 = vmatprep.subr.bf16.mxu0 %v4415_v22  ;;  %3177 = vmatpush3.bf16.msra.mxu1 %v3467_v0  ;;  %v3468_v22 = vld [vmem:[%s4965_s9 + $0x158] sm:$0xff]  }
 0x56e   :  { %3178 = vmatprep.subr.bf16.mxu1 %v3468_v22 }
 0x570   :  { %3161 = vmatpush3.bf16.msra.mxu0 %v4421_v24  ;;  %v3469_v24 = vld [vmem:[%s4965_s9 + $0x118] sm:$0xff]  }
 0x571   :  { %3162 = vmatprep.subr.bf16.mxu0 %v4428_v61  ;;  %3179 = vmatpush3.bf16.msra.mxu1 %v3469_v24  ;;  %v3470_v61 = vld [vmem:[%s4965_s9 + $0x150] sm:$0xff]  }
 0x572   :  { %3180 = vmatprep.subr.bf16.mxu1 %v3470_v61 }
 0x574   :  { %3163 = vmatpush3.bf16.msra.mxu0 %v4434_v4  ;;  %v3471_v4 = vld [vmem:[%s4965_s9 + $0x110] sm:$0xff]  }
 0x575   :  { %3192 = vmatprep.subr.bf16.mxu0 %v4618_v33  ;;  %3181 = vmatpush3.bf16.msra.mxu1 %v3471_v4  ;;  %v3475_v33 = vld [vmem:[%s4965_s9 + $0x100] sm:$0xff]  }
 0x576   :  { %3182 = vmatprep.subr.bf16.mxu1 %v3472_v38 }
 0x577   :  { %2106 = vmatmul.mubr.bf16.vlgmr.msra.gmra.mxu0 %v2644_v30 }
 0x578   :  { %3193 = vmatpush3.bf16.msra.mxu0 %v4624_v62  ;;  %2185 = vmatprep.mubr.bf16.mxu0 %v2649_v14  ;;  %v3476_v62 = vld [vmem:[%s4967_s11 + $0x18] sm:$0xff] }
 0x579   :  { %3194 = vmatprep.subr.bf16.mxu0 %v4630_v1  ;;  %3183 = vmatpush3.bf16.msra.mxu1 %v3473_v41  ;;  %v3477_v1 = vld [vmem:[%s4967_s11 + $0x10] sm:$0xff] }
 0x57a   :  { %3184 = vmatprep.subr.bf16.mxu1 %v3474_v49 }
 0x57c   :  { %3195 = vmatpush3.bf16.msra.mxu0 %v4636_v35  ;;  %v3478_v35 = vld [vmem:[%s4967_s11 + $0x8] sm:$0xff] }
 0x57d   :  { %3196 = vmatprep.subr.bf16.mxu0 %v4642_v44  ;;  %3185 = vmatpush3.bf16.msra.mxu1 %v3475_v33  ;;  %v3479_v44 = vld [vmem:[%s4967_s11] sm:$0xff] }
 0x57e   :  { %3274 = vmatprep.subr.mxu1 %v5114_v37 }
 0x580   :  { %3197 = vmatpush3.bf16.msra.mxu0 %v4648_v34  ;;  %2146 = vmatmul.mubr.bf16.vlgmr.msra.gmra.mxu1 %v2646_v51 }
 0x581   :  { %3198 = vmatprep.subr.bf16.mxu0 %v4654_v63  ;;  %3275 = vmatpush3.msra.mxu1 %v3476_v62 }
 0x582   :  { %3282 = vmatprep.mubr.msk.f32.mxu1 %vm3548_vm0, %v5114_v37  ;;  %3276 = vmatprep.subr.mxu1 %v5114_v37 }
 0x583   :  { %3277 = vmatpush3.msra.mxu1 %v3477_v1 }
 0x584   :  { %3199 = vmatpush3.bf16.msra.mxu0 %v4660_v39  ;;  %3278 = vmatprep.subr.mxu1 %v5114_v37 }
 0x585   :  { %3200 = vmatprep.subr.bf16.mxu0 %v4666_v40  ;;  %3279 = vmatpush3.msra.mxu1 %v3478_v35  ;;  %v5119_v40 = vld [vmem:[#allocation24_spill] sm:$0xff] }
 0x586   :  { %3280 = vmatprep.subr.mxu1 %v5114_v37 }
 0x587   :  { %3281 = vmatpush3.msra.mxu1 %v3479_v44 }
 0x588   :  { %3201 = vmatpush3.bf16.msra.mxu0 %v4672_v60  ;;  %v4831_v60 = vadd.f32 %v4333_v7, %v5119_v40 }
 0x589   :  { %3202 = vmatprep.subr.bf16.mxu0 %v4678_v6 }
 0x58c   :  { %3203 = vmatpush3.bf16.msra.mxu0 %v4684_v15  ;;  %v2306_v15 = vsel %vm2305_vm2, %v4831_v60, -inf }
 0x58d   :  { %3204 = vmatprep.subr.bf16.mxu0 %v4690_v25  ;;  %v4836_v25 = vpop.xlane.xlu1 %2351 }
 0x590   :  { %3205 = vmatpush3.bf16.msra.mxu0 %v4696_v3  ;;  %v2353_v3 = vsub.f32 %v4336_v19, %v4836_v25 }
 0x591   :  { %3206 = vmatprep.subr.bf16.mxu0 %v4702_v5 }
 0x592   :  { %v2354_v31 = vmul.f32 1.442695, %v2353_v3 }
 0x594   :  { %3207 = vmatpush3.bf16.msra.mxu0 %v4708_v26 }
 0x597   :  { %2186 = vmatmul.mubr.bf16.vlgmr.msra.gmra.mxu0 %v2648_v2 }
 0x617   :  { %v1997_v34 = vpop.f32.mrf.mxu0 }
 0x618   :  { %v1998_v63 = vadd.f32 %v4333_v7, %v1997_v34 }
 0x619   :  { %v3273_v39 = vpop.f32.mrf.mxu0 }
 0x61a   :  { %v2449_v6 = vsel %vm2448_vm3, %v1998_v63, -inf }
 0x61b   :  { %2450 = vmax.xlane.f32.xlu0 %v2449_v6 }
 0x61f   :  { %2307 = vmax.xlane.f32.xlu0 %v2306_v15 }
 0x620   :  { %v3142_v48 = vpop.f32.mrf.mxu1 }
 0x622   :  { %v3143_v50 = vpop.f32.mrf.mxu1 }
 0x623   :  { %v3144_v29 = vadd.f32 %v3143_v50, %v3142_v48 }
 0x624   :  { %v3145_v54 = vpop.f32.mrf.mxu1 }
 0x625   :  { %v2068_v59 = vadd.f32 %v3480_v8, %v3144_v29 }
 0x626   :  { %v3146_v20 = vpop.f32.mrf.mxu1 }
 0x637   :  { %v3164_v52 = vpop.f32.mrf.mxu0 }
 0x639   :  { %v3165_v56 = vpop.f32.mrf.mxu0 }
 0x63a   :  { %v3166_v23 = vadd.f32 %v3165_v56, %v3164_v52 }
 0x63b   :  { %v3167_v58 = vpop.f32.mrf.mxu0 }
 0x63c   :  { %v2108_v27 = vadd.f32 %v3166_v23, %v2068_v59 }
 0x63d   :  { %v3168_v46 = vpop.f32.mrf.mxu0 }
 0x640   :  { %v3186_v45 = vpop.f32.mrf.mxu1 }
 0x642   :  { %v3187_v43 = vpop.f32.mrf.mxu1 }
 0x643   :  { %v3188_v30 = vadd.f32 %v3187_v43, %v3186_v45 }
 0x644   :  { %v3189_v32 = vpop.f32.mrf.mxu1 }
 0x645   :  { %v2148_v12 = vadd.f32 %v3188_v30, %v2108_v27  ;;  %v4866_v30 = vadd.f32 %v4333_v7, %v4589_v28  ;;  %v5120_v28 = vlaneseq }
 0x646   :  { %v3190_v16 = vpop.f32.mrf.mxu1 }
 0x657   :  { %v3208_v18 = vpop.f32.mrf.mxu0 }
 0x659   :  { %v3209_v10 = vpop.f32.mrf.mxu0 }
 0x65a   :  { %v3210_v14 = vadd.f32 %v3209_v10, %v3208_v18 }
 0x65b   :  { %v3211_v0 = vpop.f32.mrf.mxu0 }
 0x65c   :  { %v2188_v22 = vadd.f32 %v3210_v14, %v2148_v12  ;;  %v2396_v12 = vsel %vm2305_vm2, %v4866_v30, -inf  ;;  %v4878_v0 = vand.u32 127, %v5120_v28 }
 0x65d   :  { %v3212_v24 = vpop.f32.mrf.mxu0 }
 0x65e   :  { %v2193_v61 = vmax.f32 %v2188_v22, 0.0  ;;  %vm2539_vm15 = vcmp.eq.s32.totalorder %v4878_v0, 0  ;;  %vm2541_vm0 = vcmp.eq.s32.totalorder %v4878_v0, 1 }
 0x660   :  { %3283 = vmatmul.mubr.msk.f32.vlgmr.msra.gmra.mxu1 %vm821_vm1, %v2193_v61  ;;  %vm2543_vm1 = vcmp.eq.s32.totalorder %v4878_v0, 2 }
 0x6a4   :  { %v2451_v5 = vpop.xlane.xlu0 %2450 }
 0x6a5   :  { %v2452_v26 = vsub.f32 %v1998_v63, %v2451_v5 }
 0x6a7   :  { %v2453_v9 = vmul.f32 1.442695, %v2452_v26 }
 0x6a8   :  { %v4840_v11 = vpop.xlane.xlu0 %2307 }
 0x6a9   :  { %3380 = vpow2.f32 %v2453_v9  ;;  %v2309_v13 = vsub.f32 %v4831_v60, %v4840_v11 }
 0x6aa   :  { %3382 = vpow2.f32 %v2354_v31 }
 0x6ab   :  { %v2310_v17 = vmul.f32 1.442695, %v2309_v13 }
 0x6ad   :  { %3384 = vpow2.f32 %v2310_v17 }
 0x6b6   :  { %v3381_v21 = vpop.eup %3380 }
 0x6b7   :  { %v2455_v55 = vsel %vm2448_vm3, %v3381_v21, 0.0  ;;  %v3383_v57 = vpop.eup %3382 }
 0x6b8   :  { %2456 = vadd.xlane.f32.xlu1 %v2455_v55  ;;  %v2356_v42 = vsel %vm2305_vm2, %v3383_v57, 0.0 }
 0x6ba   :  { %v3385_v36 = vpop.eup %3384 }
 0x6bb   :  { %v2312_v47 = vsel %vm2305_vm2, %v3385_v36, 0.0 }
 0x6bc   :  { %2357 = vadd.xlane.f32.xlu1 %v2356_v42  ;;  %2313 = vadd.xlane.f32.xlu0 %v2312_v47 }
 0x720   :  { %v2263_v8 = vpop.f32.mrf.mxu1 }
 0x721   :  { %v4870_v32 = vadd.f32 %v4333_v7, %v2263_v8  ;;  %v2279_v8 = vstv %s2652_s1 }
 0x722   :  { %v3284_v59 = vpop.f32.mrf.mxu1 }
 0x723   :  { %v2511_v14 = vsel %vm2448_vm3, %v4870_v32, -inf }
 0x741   :  { %v2457_v4 = vpop.xlane.xlu1 %2456 }
 0x742   :  { %3386 = vrcp.f32 %v2457_v4 }
 0x745   :  { %v4851_v38 = vpop.xlane.xlu1 %2357  ;;  %v4853_v41 = vpop.xlane.xlu0 %2313 }
 0x746   :  { %3388 = vrcp.f32 %v4851_v38 }
 0x747   :  { %3390 = vrcp.f32 %v4853_v41 }
 0x74f   :  { %v3387_v49 = vpop.eup %3386 }
 0x750   :  { %v2459_v51 = vmul.f32 %v3387_v49, %v3381_v21 }
 0x752   :  { %v2463_v2 = vsel %vm2448_vm3, %v2459_v51, 0.0 }
 0x753   :  { %v3389_v33 = vpop.eup %3388  ;;  %v2464_v62 = vrot.slane %v2463_v2, 4 }
 0x754   :  { %v4858_v1 = vmul.f32 %v3389_v33, %v3383_v57  ;;  %v3391_v35 = vpop.eup %3390  ;;  %v2291_v33 = vstv %s2290_s10 }
 0x755   :  { %v2465_v44 = vadd.f32 %v2464_v62, %v2463_v2  ;;  %v2316_v34 = vmul.f32 %v3391_v35, %v3385_v36  ;;  %v1732_v62 = vadd.f32 %v4333_v7, %v4728_v53  ;;  %v2297_v53 = vstv %s2656_s30 }
 0x756   :  { %v2369_v63 = vsel %vm2305_vm2, %v4858_v1, 0.0 }
 0x757   :  { %v2370_v39 = vrot.slane %v2369_v63, 4  ;;  %v2466_v40 = vrot.slane %v2465_v44, 2  ;;  %v2325_v6 = vsel %vm2305_vm2, %v2316_v34, 0.0  ;;  %v2332_v16 = vsel %vm2305_vm2, %v2316_v34, -inf  ;;  %v5121_v34 = vld [vmem:[#allocation15_spill] sm:$0xff] }
 0x758   :  { %v2326_v15 = vrot.slane %v2325_v6, 4  ;;  %vm2269_vm5 = vcmp.eq.s32.totalorder %v5121_v34, 0  ;;  %vm2273_vm6 = vcmp.eq.s32.totalorder %v5121_v34, 1  ;;  %vm2277_vm7 = vcmp.eq.s32.totalorder %v5121_v34, 2 }
 0x759   :  { %v2371_v3 = vadd.f32 %v2370_v39, %v2369_v63  ;;  %v2467_v5 = vadd.f32 %v2466_v40, %v2465_v44  ;;  %v2292_v39 = vsel %vm2269_vm5, %v2291_v33, 0  ;;  %v2294_v40 = vstv %s2655_s29 }
 0x75a   :  { %v2327_v26 = vadd.f32 %v2326_v15, %v2325_v6  ;;  %v2420_v15 = vsel %vm2305_vm2, %v1732_v62, -inf  ;;  %v2295_v7 = vsel %vm2273_vm6, %v2294_v40, %v2292_v39  ;;  %vm2281_vm8 = vcmp.eq.s32.totalorder %v5121_v34, 3 }
 0x75b   :  { %v2372_v31 = vrot.slane %v2371_v3, 2  ;;  %v2468_v9 = vrot.slane %v2467_v5, 1 }
 0x75c   :  { %v2328_v13 = vrot.slane %v2327_v26, 2 }
 0x75d   :  { %v2373_v17 = vadd.f32 %v2372_v31, %v2371_v3  ;;  %v2469_v21 = vadd.f32 %v2468_v9, %v2467_v5  ;;  %v2298_v3 = vsel %vm2277_vm7, %v2297_v53, %v2295_v7  ;;  %v2300_v5 = vstv %s2657_s14 }
 0x75e   :  { %v2329_v55 = vadd.f32 %v2328_v13, %v2327_v26  ;;  %v2301_v26 = vsel %vm2281_vm8, %v2300_v5, %v2298_v3 }
 0x75f   :  { %v2374_v57 = vrot.slane %v2373_v17, 1  ;;  %v2470_v42 = vmul.f32 0.125, %v2469_v21  ;;  %vm2302_vm9 = vcmp.eq.s32.totalorder %v4878_v0, %v2301_v26 }
 0x760   :  { %v2330_v36 = vrot.slane %v2329_v55, 1  ;;  %v2658_v13 = vsel %vm2302_vm9, 1.0, %v5114_v37 }
 0x761   :  { %v2471_v47 = vadd.f32 1e-06, %v2470_v42  ;;  %v2375_v50 = vadd.f32 %v2374_v57, %v2373_v17  ;;  %v2432_v42 = vmul.f32 %v2658_v13, %v1732_v62 }
 0x762   :  { %v2331_v48 = vadd.f32 %v2330_v36, %v2329_v55  ;;  %v2364_v55 = vmul.f32 %v2658_v13, %v4336_v19 }
 0x763   :  { %3392 = vrcp.f32 %v2471_v47  ;;  %v2433_v36 = vsel %vm2305_vm2, %v2432_v42, 0.0 }
 0x764   :  { %v2393_v52 = vadd.f32 %v2375_v50, %v2331_v48  ;;  %v2365_v57 = vsel %vm2305_vm2, %v2364_v55, 0.0 }
 0x766   :  { %v2461_v54 = vmul.f32 0.125, %v2393_v52 }
 0x768   :  { %v2462_v56 = vadd.f32 1e-06, %v2461_v54  ;;  %v2271_v54 = vstv %s2270_s15 }
 0x770   :  { %v3393_v20 = vpop.eup %3392 }
 0x771   :  { %v2473_v58 = vmul.f32 %v3393_v20, %v2462_v56  ;;  %v2272_v20 = vsel %vm2269_vm5, %v2271_v54, 0 }
 0x773   :  { %v2474_v29 = vmul.f32 %v2473_v58, %v2459_v51  ;;  %v2275_v58 = vstv %s2651_s16 }
 0x775   :  { %v2475_v46 = vand.u32 2147483647, %v2474_v29 }
 0x777   :  { %v2476_v45 = vsel %vm2448_vm3, %v2475_v46, 0.0 }
 0x778   :  { %2477 = vadd.xlane.f32.xlu0 %v2476_v45  ;;  %v2276_v45 = vsel %vm2273_vm6, %v2275_v58, %v2272_v20 }
 0x779   :  { %v2280_v59 = vsel %vm2277_vm7, %v2279_v8, %v2276_v45 }
 0x801   :  { %v2478_v23 = vpop.xlane.xlu0 %2477 }
 0x802   :  { %v2479_v43 = vmax.f32 %v2478_v23, 1e-12  ;;  %v2283_v23 = vstv %s2653_s0 }
 0x804   :  { %3394 = vrcp.f32 %v2479_v43  ;;  %v2284_v43 = vsel %vm2281_vm8, %v2283_v23, %v2280_v59 }
 0x805   :  { %vm2287_vm11 = vcmp.eq.s32.totalorder %v4878_v0, %v2284_v43 }
 0x811   :  { %v3395_v18 = vpop.eup %3394 }
 0x812   :  { %v2481_v27 = vmul.f32 %v3395_v18, %v2474_v29  ;;  %v2376_v29 = vsel %vm2305_vm2, %v4858_v1, -inf  ;;  %v2654_v18 = vsel %vm2287_vm11, 1.0, %v5114_v37 }
 0x814   :  { %v2485_v10 = vsel %vm2448_vm3, %v2481_v27, -inf }
 0x815   :  { %2486 = vmax.xlane.f32.xlu1 %v2485_v10  ;;  %v2320_v10 = vmul.f32 %v2654_v18, %v4831_v60 }
 0x819   :  { %2397 = vmax.xlane.f32.xlu1 %v2396_v12  ;;  %v2321_v12 = vsel %vm2305_vm2, %v2320_v10, 0.0 }
 0x81d   :  { %2512 = vmax.xlane.f32.xlu1 %v2511_v14  ;;  %v2408_v14 = vmul.f32 %v2654_v18, %v4866_v30 }
 0x821   :  { %2333 = vmax.xlane.f32.xlu1 %v2332_v16  ;;  %v2409_v16 = vsel %vm2305_vm2, %v2408_v14, 0.0 }
 0x89e   :  { %v4880_v22 = vpop.xlane.xlu1 %2486 }
 0x89f   :  { %vm2488_vm4 = vcmp.ge.f32.partialorder %v2481_v27, %v4880_v22 }
 0x8a0   :  { %v2489_v24 = vsel %vm2488_vm4, %v4878_v0, 8 }
 0x8a1   :  { %v2490_v61 = vsel %vm2448_vm3, %v2489_v24, 2147483647 }
 0x8a2   :  { %v4885_v4 = vpop.xlane.xlu1 %2397  ;;  %v2492_v49 = vshra.s32 %v2490_v61, 16  ;;  %v2491_v47 = vand.u32 65535, %v2490_v61 }
 0x8a3   :  { %v2399_v51 = vsub.f32 %v4866_v30, %v4885_v4 }
 0x8a4   :  { %v2494_v2 = vcvt.s32.f32 %v2492_v49  ;;  %v2493_v50 = vcvt.s32.f32 %v2491_v47 }
 0x8a5   :  { %v2400_v35 = vmul.f32 1.442695, %v2399_v51 }
 0x8a6   :  { %2495 = vmin.xlane.f32.xlu0 %v2494_v2  ;;  %v4891_v44 = vpop.xlane.xlu1 %2512 }
 0x8a7   :  { %3396 = vpow2.f32 %v2400_v35  ;;  %v2514_v63 = vsub.f32 %v4870_v32, %v4891_v44 }
 0x8a9   :  { %v2515_v6 = vmul.f32 1.442695, %v2514_v63 }
 0x8aa   :  { %2421 = vmax.xlane.f32.xlu0 %v2420_v15  ;;  %v2334_v30 = vpop.xlane.xlu1 %2333 }
 0x8ab   :  { %3398 = vpow2.f32 %v2515_v6  ;;  %v2336_v39 = vsel %vm2335_vm13, %v2334_v30, 0.0 }
 0x8b4   :  { %v3397_v31 = vpop.eup %3396 }
 0x8b5   :  { %v2402_v9 = vsel %vm2305_vm2, %v3397_v31, 0.0 }
 0x8b6   :  { %2403 = vadd.xlane.f32.xlu1 %v2402_v9 }
 0x8b8   :  { %v3399_v17 = vpop.eup %3398 }
 0x8b9   :  { %v2517_v21 = vsel %vm2448_vm3, %v3399_v17, 0.0 }
 0x8ba   :  { %2518 = vadd.xlane.f32.xlu1 %v2517_v21 }
 0x8be   :  { %2366 = vadd.xlane.f32.xlu1 %v2365_v57 }
 0x8c2   :  { %2434 = vadd.xlane.f32.xlu1 %v2433_v36 }
 0x92f   :  { %v2496_v48 = vpop.xlane.xlu0 %2495 }
 0x930   :  { %vm2497_vm10 = vcmp.eq.f32.partialorder %v2494_v2, %v2496_v48  ;;  %v2502_v28 = vcvt.f32.s32 %v2496_v48 }
 0x931   :  { %v2498_v52 = vsel %vm2497_vm10, %v2493_v50, inf }
 0x932   :  { %2499 = vmin.xlane.f32.xlu0 %v2498_v52  ;;  %v2503_v61 = vshll.u32 %v2502_v28, 16 }
 0x933   :  { %v2422_v19 = vpop.xlane.xlu0 %2421 }
 0x934   :  { %v2423_v56 = vsub.f32 %v1732_v62, %v2422_v19 }
 0x936   :  { %v2424_v46 = vmul.f32 1.442695, %v2423_v56  ;;  %2377 = vmax.xlane.f32.xlu0 %v2376_v29 }
 0x938   :  { %3400 = vpow2.f32 %v2424_v46 }
 0x93f   :  { %v2404_v34 = vpop.xlane.xlu1 %2403 }
 0x943   :  { %v2519_v6 = vpop.xlane.xlu1 %2518 }
 0x945   :  { %v3401_v27 = vpop.eup %3400 }
 0x946   :  { %v2426_v1 = vsel %vm2305_vm2, %v3401_v27, 0.0 }
 0x947   :  { %2427 = vadd.xlane.f32.xlu0 %v2426_v1 }
 0x94b   :  { %2322 = vadd.xlane.f32.xlu0 %v2321_v12 }
 0x94f   :  { %2410 = vadd.xlane.f32.xlu0 %v2409_v16  ;;  %v2483_v16 = vstv %s82_s17 }
 0x9bb   :  { %v2500_v24 = vpop.xlane.xlu0 %2499 }
 0x9bc   :  { %v2501_v49 = vcvt.f32.s32 %v2500_v24 }
 0x9be   :  { %v2504_v51 = vadd.s32 %v2503_v61, %v2501_v49 }
 0x9bf   :  { %v2378_v62 = vpop.xlane.xlu0 %2377 }
 0x9c0   :  { %vm2508_vm12 = vcmp.eq.s32.totalorder %v4878_v0, %v2504_v51  ;;  %v2379_v63 = vsel %vm2335_vm13, %v2378_v62, 0.0 }
 0x9c1   :  { %v2660_v2 = vsel %vm2508_vm12, 1.0, %v5114_v37  ;;  %v2380_v40 = vrot.slane %v2379_v63, 4 }
 0x9c2   :  { %v2523_v60 = vmul.f32 %v2660_v2, %v4870_v32  ;;  %v2337_v32 = vrot.slane %v2336_v39, 4 }
 0x9c3   :  { %v2381_v15 = vadd.f32 %v2380_v40, %v2379_v63 }
 0x9c4   :  { %v2524_v33 = vsel %vm2448_vm3, %v2523_v60, 0.0  ;;  %v2338_v53 = vadd.f32 %v2337_v32, %v2336_v39 }
 0x9c5   :  { %2525 = vadd.xlane.f32.xlu0 %v2524_v33  ;;  %v2382_v3 = vrot.slane %v2381_v15, 2 }
 0x9c6   :  { %v2339_v9 = vrot.slane %v2338_v53, 2 }
 0x9c7   :  { %v2383_v21 = vadd.f32 %v2382_v3, %v2381_v15 }
 0x9c8   :  { %v2340_v42 = vadd.f32 %v2339_v9, %v2338_v53 }
 0x9c9   :  { %v2384_v48 = vrot.slane %v2383_v21, 1 }
 0x9ca   :  { %v2341_v20 = vrot.slane %v2340_v42, 1 }
 0x9cb   :  { %v2385_v45 = vadd.f32 %v2384_v48, %v2383_v21 }
 0x9cc   :  { %v2342_v59 = vadd.f32 %v2341_v20, %v2340_v42  ;;  %v2536_v42 = vstv %s2562_s18 }
 0x9ce   :  { %v2394_v18 = vadd.f32 %v2385_v45, %v2342_v59 }
 0x9d0   :  { %v2428_v35 = vpop.xlane.xlu0 %2427 }
 0x9d1   :  { %3402 = vlog2.f32 %v2428_v35 }
 0x9d2   :  { %3404 = vlog2.f32 %v4853_v41  ;;  %v2367_v41 = vpop.xlane.xlu1 %2366 }
 0x9d3   :  { %3406 = vlog2.f32 %v2404_v34 }
 0x9d4   :  { %3408 = vlog2.f32 %v4851_v38  ;;  %v2323_v13 = vpop.xlane.xlu0 %2322 }
 0x9d5   :  { %3410 = vlog2.f32 %v2519_v6 }
 0x9d6   :  { %v2435_v47 = vpop.xlane.xlu1 %2434 }
 0x9d8   :  { %v2411_v50 = vpop.xlane.xlu0 %2410 }
 0x9de   :  { %v3403_v7 = vpop.eup %3402 }
 0x9df   :  { %v3405_v5 = vpop.eup %3404  ;;  %v2430_v26 = vmul.f32 0.6931472, %v3403_v7 }
 0x9e0   :  { %v3407_v31 = vpop.eup %3406  ;;  %v2318_v38 = vmul.f32 0.6931472, %v3405_v5 }
 0x9e1   :  { %v3409_v17 = vpop.eup %3408  ;;  %v2406_v55 = vmul.f32 0.6931472, %v3407_v31  ;;  %v2431_v57 = vadd.f32 %v2430_v26, %v2422_v19 }
 0x9e2   :  { %v2362_v36 = vmul.f32 0.6931472, %v3409_v17  ;;  %v2319_v54 = vadd.f32 %v2318_v38, %v4840_v11  ;;  %v3411_v14 = vpop.eup %3410 }
 0x9e3   :  { %v2436_v52 = vsub.f32 %v2431_v57, %v2435_v47  ;;  %v2407_v56 = vadd.f32 %v2406_v55, %v4885_v4  ;;  %v2521_v61 = vmul.f32 0.6931472, %v3411_v14 }
 0x9e4   :  { %v2363_v58 = vadd.f32 %v2362_v36, %v4836_v25  ;;  %v2324_v29 = vsub.f32 %v2319_v54, %v2323_v13  ;;  %v2482_v25 = vmul.f32 0.125, %v2394_v18 }
 0x9e5   :  { %v2412_v46 = vsub.f32 %v2407_v56, %v2411_v50  ;;  %v2437_v19 = vsel %vm2335_vm13, %v2436_v52, 0.0  ;;  %v2522_v35 = vadd.f32 %v2521_v61, %v4891_v44 }
 0x9e6   :  { %v2368_v8 = vsub.f32 %v2363_v58, %v2367_v41  ;;  %v2343_v23 = vsel %vm2335_vm13, %v2324_v29, 0.0  ;;  %v2438_v27 = vrot.slane %v2437_v19, 4  ;;  %v2484_v2 = vmul.f32 %v2483_v16, %v2482_v25 }
 0x9e7   :  { %v2413_v43 = vsel %vm2335_vm13, %v2412_v46, 0.0  ;;  %v2344_v4 = vrot.slane %v2343_v23, 4 }
 0x9e8   :  { %v2386_v11 = vsel %vm2335_vm13, %v2368_v8, 0.0  ;;  %v2414_v1 = vrot.slane %v2413_v43, 4  ;;  %v2439_v12 = vadd.f32 %v2438_v27, %v2437_v19  ;;  %vm2505_vm14 = vcmp.ge.f32.partialorder %v4880_v22, %v2484_v2 }
 0x9e9   :  { %v2387_v10 = vrot.slane %v2386_v11, 4  ;;  %v2345_v28 = vadd.f32 %v2344_v4, %v2343_v23  ;;  %v2659_v32 = vsel %vm2505_vm14, 1.0, %v5114_v37 }
 0x9ea   :  { %v2415_v24 = vadd.f32 %v2414_v1, %v2413_v43  ;;  %v2440_v51 = vrot.slane %v2439_v12, 2 }
 0x9eb   :  { %v2388_v49 = vadd.f32 %v2387_v10, %v2386_v11  ;;  %v2346_v60 = vrot.slane %v2345_v28, 2 }
 0x9ec   :  { %v2416_v33 = vrot.slane %v2415_v24, 2  ;;  %v2441_v30 = vadd.f32 %v2440_v51, %v2439_v12 }
 0x9ed   :  { %v2389_v62 = vrot.slane %v2388_v49, 2  ;;  %v2347_v63 = vadd.f32 %v2346_v60, %v2345_v28 }
 0x9ee   :  { %v2417_v39 = vadd.f32 %v2416_v33, %v2415_v24  ;;  %v2442_v15 = vrot.slane %v2441_v30, 1 }
 0x9ef   :  { %v2390_v6 = vadd.f32 %v2389_v62, %v2388_v49  ;;  %v2348_v53 = vrot.slane %v2347_v63, 1 }
 0x9f0   :  { %v2418_v3 = vrot.slane %v2417_v39, 1  ;;  %v2443_v31 = vadd.f32 %v2442_v15, %v2441_v30 }
 0x9f1   :  { %v2391_v26 = vrot.slane %v2390_v6, 1  ;;  %v2349_v41 = vadd.f32 %v2348_v53, %v2347_v63 }
 0x9f2   :  { %v2419_v22 = vadd.f32 %v2418_v3, %v2417_v39 }
 0x9f3   :  { %v2392_v44 = vadd.f32 %v2391_v26, %v2390_v6 }
 0x9f4   :  { %v2444_v17 = vadd.f32 %v2443_v31, %v2419_v22 }
 0x9f5   :  { %v2395_v55 = vadd.f32 %v2392_v44, %v2349_v41 }
 0x9f7   :  { %v2445_v38 = vadd.f32 %v2444_v17, %v2395_v55 }
 0x9f9   :  { %v2447_v47 = vmul.f32 0.0625, %v2445_v38 }
 0xa4e   :  { %v2526_v34 = vpop.xlane.xlu0 %2525 }
 0xa4f   :  { %v2527_v40 = vsub.f32 %v2522_v35, %v2526_v34 }
 0xa51   :  { %v2528_v7 = vmul.f32 %v2659_v32, %v2527_v40 }
 0xa53   :  { %v2529_v5 = vrot.slane %v2528_v7, 4 }
 0xa55   :  { %v2530_v9 = vadd.f32 %v2529_v5, %v2528_v7 }
 0xa57   :  { %v2531_v13 = vrot.slane %v2530_v9, 2 }
 0xa59   :  { %v2532_v21 = vadd.f32 %v2531_v13, %v2530_v9 }
 0xa5b   :  { %v2533_v57 = vrot.slane %v2532_v21, 1 }
 0xa5d   :  { %v2534_v37 = vadd.f32 %v2533_v57, %v2532_v21 }
 0xa5f   :  { %v2535_v36 = vmul.f32 0.125, %v2534_v37 }
 0xa61   :  { %v2537_v48 = vmul.f32 %v2536_v42, %v2535_v36 }
 0xa63   :  { %v2538_v50 = vadd.f32 %v2537_v48, %v2447_v47 }
 0xa65   :  { %v2540_v52 = vsel %vm2539_vm15, %v2538_v50, 0.0 }
 0xa66   :  { %v2542_v54 = vsel %vm2541_vm0, %v2447_v47, %v2540_v52 }
 0xa67   :  { %v2544_v56 = vsel %vm2543_vm1, %v2535_v36, %v2542_v54 }
 0xa68   :  { %2545 = vst [vmem:[#allocation8] sm:$0x1] %v2544_v56 }
 0xa69   :  { %3528 = shalt.err (!%p3525_p5)
}
 0xa6a   :  { %2555 = dma.vmem_to_hbm [thread:$0]  %s2553_s20, 16, %s4969_s13, [#allocation3]  }
 0xa6b   :  { %3541 = dma.done.wait [#allocation3], 16  }
 0xa6c   :  { %3542 = vsyncadd [#allocation3], 4294967280 }
 0xa6d   :  { %2559 = vsyncpa [#allocation3], 1 }
 0xa6e   :  { %2560 = vsyncpa [#allocation4], 1 }
 0xa6f   :  { %2561 = vsyncpa [#allocation6], 1 }

</bundles_post_ra>
